<compile_context>
chip_gen: v7x
topology: tpu7x:2x2x1
jax: 0.10.0
libtpu: 0.0.40
codegen_flags: <defaults>
</compile_context>

<pallas_src>
import functools

import jax
import jax.numpy as jnp
from jax.experimental import pallas as pl
from jax.experimental.pallas import tpu as pltpu

INPUT_SIZE = 768
ACCUMULATOR_SIZE = 512
ADDITIONAL_HIDDEN_LAYER_SIZE = 16
OUTPUT_SIZE = 1
QA = 255.0


def _screlu(x, m):
    c = jnp.clip(x, 0.0, m)
    return c * c


def _round_up(x, m):
    return (x + m - 1) // m * m


def nnue_kernel(stm_ref, nstm_ref,
                w_acc_ref, b_acc_ref,
                w_hid_ref, b_hid_ref,
                w_out_ref, b_out_ref,
                out_ref):
    # In-kernel f32 -> bf16 cast (lossless for 0/1 features): single HBM pass
    # over the inputs instead of a wrapper cast pass plus the kernel read.
    stm = stm_ref[...].astype(jnp.bfloat16)                            # (T, 768)
    nstm = nstm_ref[...].astype(jnp.bfloat16)                          # (T, 768)

    w_acc = w_acc_ref[...]                                             # (768, 512) bf16

    # Two dots against the same VMEM-resident w_acc (no concatenate copy),
    # bf16 operands / f32 accumulation.
    acc_stm = jnp.dot(stm, w_acc,
                      preferred_element_type=jnp.float32) + b_acc_ref[...]
    acc_nstm = jnp.dot(nstm, w_acc,
                       preferred_element_type=jnp.float32) + b_acc_ref[...]

    # SCReLU in f32, then bf16 operands for the lane-starved (N=16) hidden
    # matmul so it takes the native MXU path.
    a_stm = _screlu(acc_stm, QA).astype(jnp.bfloat16)                  # (T, 512)
    a_nstm = _screlu(acc_nstm, QA).astype(jnp.bfloat16)                # (T, 512)

    # hidden(concat(stm, nstm)) == a_stm @ W_hid[:512] + a_nstm @ W_hid[512:]
    # (static sublane slices of the resident bf16 weight).
    h = (jnp.dot(a_stm, w_hid_ref[0:ACCUMULATOR_SIZE, :],
                 preferred_element_type=jnp.float32)
         + jnp.dot(a_nstm, w_hid_ref[ACCUMULATOR_SIZE:2 * ACCUMULATOR_SIZE, :],
                   preferred_element_type=jnp.float32)
         + b_hid_ref[...])
    h = _screlu(h, QA)                                                 # (T, 16) f32

    # Output layer (16 -> 1) as a VPU multiply + XLU lane reduction; w_out and
    # b_out already carry the 1/QA dequantization (folded in the wrapper).
    out = jnp.sum(h * w_out_ref[...], axis=-1, keepdims=True) + b_out_ref[...]
    out_ref[...] = out                                                 # (T, 1)


@functools.partial(jax.jit, static_argnames=("tile_b",))
def nnue_forward(stm, nstm, params, tile_b=1024):
    B = stm.shape[0]
    # Big tiles amortize per-grid-step overhead; cap at ceil(B/2) rounded to a
    # sublane multiple so v7x's two TensorCores both get a grid step, and never
    # drop below one sublane row.
    tile_b = _round_up(max(8, min(tile_b, _round_up(pl.cdiv(B, 2), 8))), 8)
    grid = (pl.cdiv(B, tile_b),)

    # Weight prep (tiny, one-off). bf16 for both MXU layers; biases stay f32.
    w_acc = params["w_acc"].astype(jnp.bfloat16)                       # (768, 512)
    b_acc = params["b_acc"].astype(jnp.float32)                        # (1, 512)
    w_hid = params["w_hid"].astype(jnp.bfloat16)                       # (1024, 16)
    b_hid = params["b_hid"].astype(jnp.float32)                        # (1, 16)
    # Fold the final /QA into the output layer; lay w_out out as a (1, 16) row
    # for the broadcast-multiply + lane reduction.
    w_out = (params["w_out"].astype(jnp.float32) / QA).T               # (1, 16)
    b_out = params["b_out"].astype(jnp.float32) / QA                   # (1, 1)

    batch_spec = pl.BlockSpec((tile_b, INPUT_SIZE), lambda b: (b, 0))

    def resident(shape):
        # Constant index_map: block never changes -> weights stay VMEM-resident.
        return pl.BlockSpec(shape, lambda b: (0, 0))

    out = pl.pallas_call(
        nnue_kernel,
        out_shape=jax.ShapeDtypeStruct((B, OUTPUT_SIZE), jnp.float32),
        grid=grid,
        in_specs=[
            batch_spec,                                                        # stm tile (f32)
            batch_spec,                                                        # nstm tile (f32)
            resident((INPUT_SIZE, ACCUMULATOR_SIZE)),                          # w_acc bf16
            resident((1, ACCUMULATOR_SIZE)),                                   # b_acc
            resident((2 * ACCUMULATOR_SIZE, ADDITIONAL_HIDDEN_LAYER_SIZE)),    # w_hid bf16
            resident((1, ADDITIONAL_HIDDEN_LAYER_SIZE)),                       # b_hid
            resident((1, ADDITIONAL_HIDDEN_LAYER_SIZE)),                       # w_out.T / QA
            resident((1, OUTPUT_SIZE)),                                        # b_out / QA
        ],
        out_specs=pl.BlockSpec((tile_b, OUTPUT_SIZE), lambda b: (b, 0)),
        compiler_params=pltpu.CompilerParams(
            # Shard batch tiles across both TensorCores on v7x; no-op elsewhere.
            dimension_semantics=("parallel",),
            # f32 input tiles at tile_b=1024 double-buffered ~13 MiB + <1 MiB
            # resident weights; 48 MiB leaves headroom under v7x's 64 MiB.
            vmem_limit_bytes=48 << 20,
        ),
    )(stm.astype(jnp.float32), nstm.astype(jnp.float32),
      w_acc, b_acc, w_hid, b_hid, w_out, b_out)
    return out


def init_params(key):
    """Deterministic init mimicking nn.Linear default (U[-1/sqrt(fan_in), 1/sqrt(fan_in)]).
    Weights stored as [in_features, out_features]."""
    def linear(k, fan_in, fan_out):
        kw, kb = jax.random.split(k)
        bound = 1.0 / jnp.sqrt(float(fan_in))
        w = jax.random.uniform(kw, (fan_in, fan_out), jnp.float32, -bound, bound)
        b = jax.random.uniform(kb, (1, fan_out), jnp.float32, -bound, bound)
        return w, b

    k1, k2, k3 = jax.random.split(key, 3)
    w_acc, b_acc = linear(k1, INPUT_SIZE, ACCUMULATOR_SIZE)
    w_hid, b_hid = linear(k2, 2 * ACCUMULATOR_SIZE, ADDITIONAL_HIDDEN_LAYER_SIZE)
    w_out, b_out = linear(k3, ADDITIONAL_HIDDEN_LAYER_SIZE, OUTPUT_SIZE)
    return dict(w_acc=w_acc, b_acc=b_acc,
                w_hid=w_hid, b_hid=b_hid,
                w_out=w_out, b_out=b_out)


def nnue_reference(stm, nstm, params):
    """Pure-JAX reference mirroring the kernel numerics: bf16 operands on both
    MXU layers (lossless for the 0/1 inputs, ~0.4% relative on weights /
    activations), f32 accumulation and f32 elsewhere; same structure as the
    PyTorch module."""
    hp = jax.lax.Precision.HIGHEST
    f32 = jnp.float32
    w_acc = params["w_acc"].astype(jnp.bfloat16).astype(f32)
    w_hid = params["w_hid"].astype(jnp.bfloat16).astype(f32)

    stm_v = jnp.dot(stm.astype(f32), w_acc, precision=hp) + params["b_acc"]
    nstm_v = jnp.dot(nstm.astype(f32), w_acc, precision=hp) + params["b_acc"]
    combined = _screlu(jnp.concatenate([stm_v, nstm_v], axis=1), QA)
    combined = combined.astype(jnp.bfloat16).astype(f32)
    h = _screlu(jnp.dot(combined, w_hid, precision=hp) + params["b_hid"], QA)
    out = jnp.dot(h, params["w_out"].astype(f32), precision=hp) + params["b_out"]
    return out / QA


if __name__ == "__main__":
    key = jax.random.PRNGKey(0)
    kp, ks, kn = jax.random.split(key, 3)

    params = init_params(kp)

    # Small demo batch (matches the module's expected (B, 768) sparse 0/1 inputs).
    B = 8
    stm = (jax.random.uniform(ks, (B, INPUT_SIZE)) < 0.05).astype(jnp.float32)
    nstm = (jax.random.uniform(kn, (B, INPUT_SIZE)) < 0.05).astype(jnp.float32)

    out = jax.block_until_ready(nnue_forward(stm, nstm, params))
    ref = nnue_reference(stm, nstm, params)
    assert out.shape == (B, OUTPUT_SIZE)
    assert jnp.allclose(out, ref, rtol=2e-3, atol=1e-4), (out, ref)

    # Larger, non-tile-divisible batch: exercises a 2-step grid (both v7x TCs)
    # and the masked partial last block (no wrapper pad / slice).
    B2 = 200
    ks2, kn2 = jax.random.split(jax.random.PRNGKey(1))
    stm2 = (jax.random.uniform(ks2, (B2, INPUT_SIZE)) < 0.05).astype(jnp.float32)
    nstm2 = (jax.random.uniform(kn2, (B2, INPUT_SIZE)) < 0.05).astype(jnp.float32)

    out2 = jax.block_until_ready(nnue_forward(stm2, nstm2, params))
    ref2 = nnue_reference(stm2, nstm2, params)
    assert out2.shape == (B2, OUTPUT_SIZE)
    assert jnp.allclose(out2, ref2, rtol=2e-3, atol=1e-4), (out2, ref2)

    print("KERNEL_OK")
</pallas_src>

<mosaic_0001>
module attributes {stable_mosaic.version = 11 : i64} {
  func.func @nnue_kernel(%arg0: i32, %arg1: memref<8x768xf32, #tpu.memory_space<vmem>>, %arg2: memref<8x768xf32, #tpu.memory_space<vmem>>, %arg3: memref<768x512xbf16, #tpu.memory_space<vmem>>, %arg4: memref<1x512xf32, #tpu.memory_space<vmem>>, %arg5: memref<1024x16xbf16, #tpu.memory_space<vmem>>, %arg6: memref<1x16xf32, #tpu.memory_space<vmem>>, %arg7: memref<1x16xf32, #tpu.memory_space<vmem>>, %arg8: memref<1x1xf32, #tpu.memory_space<vmem>>, %arg9: memref<8x1xf32, #tpu.memory_space<vmem>>) attributes {dimension_semantics = [#tpu.dimension_semantics<parallel>], iteration_bounds = array<i64: 1>, scalar_prefetch = 0 : i64, scratch_operands = 0 : i64, tpu.core_type = #tpu.core_type<tc>, window_params = [{transform_indices = @transform_0, window_bounds = array<i64: 8, 768>}, {transform_indices = @transform_1, window_bounds = array<i64: 8, 768>}, {pipeline_mode = #tpu.pipeline_mode<synchronous>, transform_indices = @transform_2, window_bounds = array<i64: 768, 512>}, {pipeline_mode = #tpu.pipeline_mode<synchronous>, transform_indices = @transform_3, window_bounds = array<i64: 1, 512>}, {pipeline_mode = #tpu.pipeline_mode<synchronous>, transform_indices = @transform_4, window_bounds = array<i64: 1024, 16>}, {pipeline_mode = #tpu.pipeline_mode<synchronous>, transform_indices = @transform_5, window_bounds = array<i64: 1, 16>}, {pipeline_mode = #tpu.pipeline_mode<synchronous>, transform_indices = @transform_6, window_bounds = array<i64: 1, 16>}, {pipeline_mode = #tpu.pipeline_mode<synchronous>, transform_indices = @transform_7, window_bounds = array<i64: 1, 1>}, {transform_indices = @transform_8, window_bounds = array<i64: 8, 1>}]} {
    %c0 = arith.constant 0 : index
    %c0_0 = arith.constant 0 : index
    %0 = vector.load %arg1[%c0, %c0_0] : memref<8x768xf32, #tpu.memory_space<vmem>>, vector<8x768xf32>
    %1 = arith.truncf %0 : vector<8x768xf32> to vector<8x768xbf16>
    %c0_1 = arith.constant 0 : index
    %c0_2 = arith.constant 0 : index
    %2 = vector.load %arg2[%c0_1, %c0_2] : memref<8x768xf32, #tpu.memory_space<vmem>>, vector<8x768xf32>
    %3 = arith.truncf %2 : vector<8x768xf32> to vector<8x768xbf16>
    %c0_3 = arith.constant 0 : index
    %c0_4 = arith.constant 0 : index
    %4 = vector.load %arg3[%c0_3, %c0_4] : memref<768x512xbf16, #tpu.memory_space<vmem>>, vector<768x512xbf16>
    %cst = arith.constant dense<0.000000e+00> : vector<8x512xf32>
    %5 = tpu.matmul %1, %4, %cst {dimension_numbers = #tpu.dot_dimension_numbers<[1], [0], [0], [1], [0, 0, 1, 1], [], []>} : vector<8x768xbf16>, vector<768x512xbf16>, vector<8x512xf32> -> vector<8x512xf32>
    %c0_5 = arith.constant 0 : index
    %c0_6 = arith.constant 0 : index
    %6 = vector.load %arg4[%c0_5, %c0_6] : memref<1x512xf32, #tpu.memory_space<vmem>>, vector<1x512xf32>
    %7 = vector.broadcast %6 : vector<1x512xf32> to vector<8x512xf32>
    %8 = arith.addf %5, %7 : vector<8x512xf32>
    %cst_7 = arith.constant dense<0.000000e+00> : vector<8x512xf32>
    %9 = tpu.matmul %3, %4, %cst_7 {dimension_numbers = #tpu.dot_dimension_numbers<[1], [0], [0], [1], [0, 0, 1, 1], [], []>} : vector<8x768xbf16>, vector<768x512xbf16>, vector<8x512xf32> -> vector<8x512xf32>
    %c0_8 = arith.constant 0 : index
    %c0_9 = arith.constant 0 : index
    %10 = vector.load %arg4[%c0_8, %c0_9] : memref<1x512xf32, #tpu.memory_space<vmem>>, vector<1x512xf32>
    %11 = vector.broadcast %10 : vector<1x512xf32> to vector<8x512xf32>
    %12 = arith.addf %9, %11 : vector<8x512xf32>
    %cst_10 = arith.constant 0.000000e+00 : f32
    %cst_11 = arith.constant 2.550000e+02 : f32
    %13 = vector.broadcast %cst_10 : f32 to vector<8x512xf32>
    %14 = arith.maximumf %13, %8 : vector<8x512xf32>
    %15 = vector.broadcast %cst_11 : f32 to vector<8x512xf32>
    %16 = arith.minimumf %15, %14 : vector<8x512xf32>
    %17 = arith.mulf %16, %16 : vector<8x512xf32>
    %18 = arith.truncf %17 : vector<8x512xf32> to vector<8x512xbf16>
    %cst_12 = arith.constant 0.000000e+00 : f32
    %cst_13 = arith.constant 2.550000e+02 : f32
    %19 = vector.broadcast %cst_12 : f32 to vector<8x512xf32>
    %20 = arith.maximumf %19, %12 : vector<8x512xf32>
    %21 = vector.broadcast %cst_13 : f32 to vector<8x512xf32>
    %22 = arith.minimumf %21, %20 : vector<8x512xf32>
    %23 = arith.mulf %22, %22 : vector<8x512xf32>
    %24 = arith.truncf %23 : vector<8x512xf32> to vector<8x512xbf16>
    %c0_14 = arith.constant 0 : index
    %c0_15 = arith.constant 0 : index
    %25 = vector.load %arg5[%c0_14, %c0_15] : memref<1024x16xbf16, #tpu.memory_space<vmem>>, vector<512x16xbf16>
    %cst_16 = arith.constant dense<0.000000e+00> : vector<8x16xf32>
    %26 = tpu.matmul %18, %25, %cst_16 {dimension_numbers = #tpu.dot_dimension_numbers<[1], [0], [0], [1], [0, 0, 1, 1], [], []>} : vector<8x512xbf16>, vector<512x16xbf16>, vector<8x16xf32> -> vector<8x16xf32>
    %c512 = arith.constant 512 : index
    %c0_17 = arith.constant 0 : index
    %27 = vector.load %arg5[%c512, %c0_17] : memref<1024x16xbf16, #tpu.memory_space<vmem>>, vector<512x16xbf16>
    %cst_18 = arith.constant dense<0.000000e+00> : vector<8x16xf32>
    %28 = tpu.matmul %24, %27, %cst_18 {dimension_numbers = #tpu.dot_dimension_numbers<[1], [0], [0], [1], [0, 0, 1, 1], [], []>} : vector<8x512xbf16>, vector<512x16xbf16>, vector<8x16xf32> -> vector<8x16xf32>
    %29 = arith.addf %26, %28 : vector<8x16xf32>
    %c0_19 = arith.constant 0 : index
    %c0_20 = arith.constant 0 : index
    %30 = vector.load %arg6[%c0_19, %c0_20] : memref<1x16xf32, #tpu.memory_space<vmem>>, vector<1x16xf32>
    %31 = vector.broadcast %30 : vector<1x16xf32> to vector<8x16xf32>
    %32 = arith.addf %29, %31 : vector<8x16xf32>
    %cst_21 = arith.constant 0.000000e+00 : f32
    %cst_22 = arith.constant 2.550000e+02 : f32
    %33 = vector.broadcast %cst_21 : f32 to vector<8x16xf32>
    %34 = arith.maximumf %33, %32 : vector<8x16xf32>
    %35 = vector.broadcast %cst_22 : f32 to vector<8x16xf32>
    %36 = arith.minimumf %35, %34 : vector<8x16xf32>
    %37 = arith.mulf %36, %36 : vector<8x16xf32>
    %c0_23 = arith.constant 0 : index
    %c0_24 = arith.constant 0 : index
    %38 = vector.load %arg7[%c0_23, %c0_24] : memref<1x16xf32, #tpu.memory_space<vmem>>, vector<1x16xf32>
    %39 = vector.broadcast %38 : vector<1x16xf32> to vector<8x16xf32>
    %40 = arith.mulf %37, %39 : vector<8x16xf32>
    %cst_25 = arith.constant dense<0.000000e+00> : vector<8xf32>
    %41 = vector.multi_reduction <add>, %40, %cst_25 [1] : vector<8x16xf32> to vector<8xf32>
    %42 = vector.shape_cast %41 : vector<8xf32> to vector<8x1xf32>
    %c0_26 = arith.constant 0 : index
    %c0_27 = arith.constant 0 : index
    %43 = vector.load %arg8[%c0_26, %c0_27] : memref<1x1xf32, #tpu.memory_space<vmem>>, vector<1x1xf32>
    %44 = vector.broadcast %43 : vector<1x1xf32> to vector<8x1xf32>
    %45 = arith.addf %42, %44 : vector<8x1xf32>
    %c0_28 = arith.constant 0 : index
    %c0_29 = arith.constant 0 : index
    %46 = vector.load %arg9[%c0_28, %c0_29] : memref<8x1xf32, #tpu.memory_space<vmem>>, vector<8x1xf32>
    tpu.vector_store %arg9[%c0_28, %c0_29], %45 {strides = array<i32>} : memref<8x1xf32, #tpu.memory_space<vmem>>, vector<8x1xf32>,
    return
  }
  func.func @transform_0(%arg0: i32) -> (i32, i32) {
    %c0_i32 = arith.constant 0 : i32
    %c0_i32_0 = arith.constant 0 : i32
    return %arg0, %c0_i32 : i32, i32
  }
  func.func @transform_1(%arg0: i32) -> (i32, i32) {
    %c0_i32 = arith.constant 0 : i32
    %c0_i32_0 = arith.constant 0 : i32
    return %arg0, %c0_i32 : i32, i32
  }
  func.func @transform_2(%arg0: i32) -> (i32, i32) {
    %c0_i32 = arith.constant 0 : i32
    %c0_i32_0 = arith.constant 0 : i32
    %c0_i32_1 = arith.constant 0 : i32
    return %c0_i32, %c0_i32_0 : i32, i32
  }
  func.func @transform_3(%arg0: i32) -> (i32, i32) {
    %c0_i32 = arith.constant 0 : i32
    %c0_i32_0 = arith.constant 0 : i32
    %c0_i32_1 = arith.constant 0 : i32
    return %c0_i32, %c0_i32_0 : i32, i32
  }
  func.func @transform_4(%arg0: i32) -> (i32, i32) {
    %c0_i32 = arith.constant 0 : i32
    %c0_i32_0 = arith.constant 0 : i32
    %c0_i32_1 = arith.constant 0 : i32
    return %c0_i32, %c0_i32_0 : i32, i32
  }
  func.func @transform_5(%arg0: i32) -> (i32, i32) {
    %c0_i32 = arith.constant 0 : i32
    %c0_i32_0 = arith.constant 0 : i32
    %c0_i32_1 = arith.constant 0 : i32
    return %c0_i32, %c0_i32_0 : i32, i32
  }
  func.func @transform_6(%arg0: i32) -> (i32, i32) {
    %c0_i32 = arith.constant 0 : i32
    %c0_i32_0 = arith.constant 0 : i32
    %c0_i32_1 = arith.constant 0 : i32
    return %c0_i32, %c0_i32_0 : i32, i32
  }
  func.func @transform_7(%arg0: i32) -> (i32, i32) {
    %c0_i32 = arith.constant 0 : i32
    %c0_i32_0 = arith.constant 0 : i32
    %c0_i32_1 = arith.constant 0 : i32
    return %c0_i32, %c0_i32_0 : i32, i32
  }
  func.func @transform_8(%arg0: i32) -> (i32, i32) {
    %c0_i32 = arith.constant 0 : i32
    %c0_i32_0 = arith.constant 0 : i32
    return %arg0, %c0_i32 : i32, i32
  }
}

</mosaic_0001>

<bundles_post_ra>
// kernel: nnue_forward.1
= control target key start
LH: loop header
LB: loop body
LE: loop exit
PB: predicated region body
PF: predicated region fallthrough
CT: control target
= control target key end

     0   :  { %vm2445_vm0 = vcmask 130048   ;;  %vm2457_vm1 = vcmask 7168   ;;  %s4848_s2 = inlined_call_operand.vmem [shape: bf16[768,512], index: 2, kind: input, shape index: {}]   ;;  %s4849_s0 = inlined_call_operand.vmem [shape: f32[8,768], index: 0, kind: input, shape index: {}]   ;;  %s4850_s1 = inlined_call_operand.vmem [shape: f32[8,768], index: 1, kind: input, shape index: {}]   ;;  %s4851_s4 = inlined_call_operand.vmem [shape: bf16[1024,16], index: 4, kind: input, shape index: {}]   ;;  %s4852_s3 = inlined_call_operand.vmem [shape: f32[1,512], index: 3, kind: input, shape index: {}]   ;;  %s4853_s7 = inlined_call_operand.<no memory space> [shape: f32[1,1], index: 7, kind: input, shape index: {}]   ;;  %s4854_s5 = inlined_call_operand.vmem [shape: f32[1,16], index: 5, kind: input, shape index: {}]   ;;  %s4855_s6 = inlined_call_operand.vmem [shape: f32[1,16], index: 6, kind: input, shape index: {}]   ;;  %s4856_s8 = inlined_call_operand.vmem [shape: f32[8,1], index: 8, kind: output, shape index: {}]  }
   0x1   :  { %v2850_v0 = vld [vmem:[%s4848_s2 + $0x4] ss:$16 sps:$4 sm:$0xff]   ;;  %v2852_v1 = vld [vmem:[%s4848_s2 + $0xc] ss:$16 sps:$4 sm:$0xff]   ;;  %v2854_v2 = vld [vmem:[%s4848_s2] ss:$16 sps:$4 sm:$0xff]  }
   0x2   :  { %1230 = vmatprep.subr.bf16.mxu0 %v2850_v0  ;;  %v2855_v3 = vld [vmem:[%s4848_s2 + $0x8] ss:$16 sps:$4 sm:$0xff]   ;;  %1353 = vmatprep.subr.bf16.mxu1 %v2852_v1  ;;  %v2856_v4 = vld [vmem:[%s4848_s2 + $0x24] ss:$16 sps:$4 sm:$0xff]   ;;  %v2858_v5 = vld [vmem:[%s4848_s2 + $0x2c] ss:$16 sps:$4 sm:$0xff]  }
   0x3   :  { %1231 = vmatpush1.bf16.msra.mxu0 %v2854_v2  ;;  %1354 = vmatpush1.bf16.msra.mxu1 %v2855_v3  ;;  %v2860_v6 = vld [vmem:[%s4848_s2 + $0x20] ss:$16 sps:$4 sm:$0xff]   ;;  %v2861_v7 = vld [vmem:[%s4848_s2 + $0x28] ss:$16 sps:$4 sm:$0xff]   ;;  %v2862_v8 = vld [vmem:[%s4848_s2 + $0x44] ss:$16 sps:$4 sm:$0xff]  }
   0x4   :  { %1232 = vmatprep.subr.bf16.mxu0 %v2856_v4  ;;  %1355 = vmatprep.subr.bf16.mxu1 %v2858_v5  ;;  %v2864_v9 = vld [vmem:[%s4848_s2 + $0x4c] ss:$16 sps:$4 sm:$0xff]   ;;  %v2866_v10 = vld [vmem:[%s4848_s2 + $0x40] ss:$16 sps:$4 sm:$0xff]   ;;  %v2867_v11 = vld [vmem:[%s4848_s2 + $0x48] ss:$16 sps:$4 sm:$0xff]  }
   0x5   :  { %v2868_v12 = vld [vmem:[%s4848_s2 + $0x64] ss:$16 sps:$4 sm:$0xff]   ;;  %v2870_v13 = vld [vmem:[%s4848_s2 + $0x6c] ss:$16 sps:$4 sm:$0xff]   ;;  %v2872_v14 = vld [vmem:[%s4848_s2 + $0x60] ss:$16 sps:$4 sm:$0xff]  }
   0x6   :  { %v2873_v15 = vld [vmem:[%s4848_s2 + $0x68] ss:$16 sps:$4 sm:$0xff]   ;;  %v2874_v16 = vld [vmem:[%s4848_s2 + $0x84] ss:$16 sps:$4 sm:$0xff]   ;;  %v2876_v17 = vld [vmem:[%s4848_s2 + $0x8c] ss:$16 sps:$4 sm:$0xff]  }
   0x7   :  { %1233 = vmatpush1.bf16.msra.mxu0 %v2860_v6  ;;  %1356 = vmatpush1.bf16.msra.mxu1 %v2861_v7  ;;  %v2878_v18 = vld [vmem:[%s4848_s2 + $0x80] ss:$16 sps:$4 sm:$0xff]   ;;  %v2879_v19 = vld [vmem:[%s4848_s2 + $0x88] ss:$16 sps:$4 sm:$0xff]   ;;  %v2880_v20 = vld [vmem:[%s4848_s2 + $0xa4] ss:$16 sps:$4 sm:$0xff]  }
   0x8   :  { %1234 = vmatprep.subr.bf16.mxu0 %v2862_v8  ;;  %1357 = vmatprep.subr.bf16.mxu1 %v2864_v9  ;;  %v2882_v21 = vld [vmem:[%s4848_s2 + $0xac] ss:$16 sps:$4 sm:$0xff]   ;;  %v2884_v22 = vld [vmem:[%s4848_s2 + $0xa0] ss:$16 sps:$4 sm:$0xff]   ;;  %v2885_v23 = vld [vmem:[%s4848_s2 + $0xa8] ss:$16 sps:$4 sm:$0xff]  }
   0x9   :  { %v2886_v24 = vld [vmem:[%s4848_s2 + $0xc4] ss:$16 sps:$4 sm:$0xff]   ;;  %v2888_v25 = vld [vmem:[%s4848_s2 + $0xcc] ss:$16 sps:$4 sm:$0xff]   ;;  %v2890_v26 = vld [vmem:[%s4848_s2 + $0xc0] ss:$16 sps:$4 sm:$0xff]  }
   0xa   :  { %v2891_v27 = vld [vmem:[%s4848_s2 + $0xc8] ss:$16 sps:$4 sm:$0xff]   ;;  %v2892_v28 = vld [vmem:[%s4848_s2 + $0xe4] ss:$16 sps:$4 sm:$0xff]   ;;  %v2894_v29 = vld [vmem:[%s4848_s2 + $0xec] ss:$16 sps:$4 sm:$0xff]  }
   0xb   :  { %1235 = vmatpush1.bf16.msra.mxu0 %v2866_v10  ;;  %1358 = vmatpush1.bf16.msra.mxu1 %v2867_v11  ;;  %v2896_v30 = vld [vmem:[%s4848_s2 + $0xe0] ss:$16 sps:$4 sm:$0xff]   ;;  %v2897_v31 = vld [vmem:[%s4848_s2 + $0xe8] ss:$16 sps:$4 sm:$0xff]   ;;  %v2898_v32 = vld [vmem:[%s4848_s2 + $0x104] ss:$16 sps:$4 sm:$0xff]  }
   0xc   :  { %1236 = vmatprep.subr.bf16.mxu0 %v2868_v12  ;;  %1359 = vmatprep.subr.bf16.mxu1 %v2870_v13  ;;  %v2900_v33 = vld [vmem:[%s4848_s2 + $0x10c] ss:$16 sps:$4 sm:$0xff]   ;;  %v2902_v34 = vld [vmem:[%s4848_s2 + $0x100] ss:$16 sps:$4 sm:$0xff]   ;;  %v2903_v35 = vld [vmem:[%s4848_s2 + $0x108] ss:$16 sps:$4 sm:$0xff]  }
   0xd   :  { %v2904_v36 = vld [vmem:[%s4848_s2 + $0x124] ss:$16 sps:$4 sm:$0xff]   ;;  %v2906_v37 = vld [vmem:[%s4848_s2 + $0x12c] ss:$16 sps:$4 sm:$0xff]   ;;  %v2908_v38 = vld [vmem:[%s4848_s2 + $0x120] ss:$16 sps:$4 sm:$0xff]  }
   0xe   :  { %v2909_v39 = vld [vmem:[%s4848_s2 + $0x128] ss:$16 sps:$4 sm:$0xff]   ;;  %v2910_v40 = vld [vmem:[%s4848_s2 + $0x144] ss:$16 sps:$4 sm:$0xff]   ;;  %v2912_v41 = vld [vmem:[%s4848_s2 + $0x14c] ss:$16 sps:$4 sm:$0xff]  }
   0xf   :  { %1237 = vmatpush1.bf16.msra.mxu0 %v2872_v14  ;;  %1360 = vmatpush1.bf16.msra.mxu1 %v2873_v15  ;;  %v3418_v42 = vld [vmem:[%s4848_s2 + $0x140] ss:$16 sps:$4 sm:$0xff]   ;;  %v3423_v43 = vld [vmem:[%s4848_s2 + $0x148] ss:$16 sps:$4 sm:$0xff]   ;;  %v3428_v44 = vld [vmem:[%s4848_s2 + $0x164] ss:$16 sps:$4 sm:$0xff]  }
  0x10   :  { %1238 = vmatprep.subr.bf16.mxu0 %v2874_v16  ;;  %1361 = vmatprep.subr.bf16.mxu1 %v2876_v17  ;;  %v3433_v45 = vld [vmem:[%s4848_s2 + $0x16c] ss:$16 sps:$4 sm:$0xff]   ;;  %v3441_v47 = vld [vmem:[%s4848_s2 + $0x160] ss:$16 sps:$4 sm:$0xff]   ;;  %v3448_v49 = vld [vmem:[%s4848_s2 + $0x168] ss:$16 sps:$4 sm:$0xff]  }
  0x11   :  { %v33_v46 = vld [vmem:[%s4849_s0 + $0x8] sm:$0xff]  ;;  %v3455_v50 = vld [vmem:[%s4848_s2 + $0x184] ss:$16 sps:$4 sm:$0xff]   ;;  %v3467_v52 = vld [vmem:[%s4848_s2 + $0x180] ss:$16 sps:$4 sm:$0xff]  }
  0x12   :  { %v39_v48 = vpack.c.bf16 %v33_v46, %v33_v46  ;;  %v3460_v51 = vld [vmem:[%s4848_s2 + $0x18c] ss:$16 sps:$4 sm:$0xff]   ;;  %v3472_v53 = vld [vmem:[%s4848_s2 + $0x188] ss:$16 sps:$4 sm:$0xff]   ;;  %v3479_v54 = vld [vmem:[%s4848_s2 + $0x1a4] ss:$16 sps:$4 sm:$0xff]  }
  0x13   :  { %1239 = vmatpush1.bf16.msra.mxu0 %v2878_v18  ;;  %1362 = vmatpush1.bf16.msra.mxu1 %v2879_v19  ;;  %v3484_v55 = vld [vmem:[%s4848_s2 + $0x1ac] ss:$16 sps:$4 sm:$0xff]   ;;  %v3491_v56 = vld [vmem:[%s4848_s2 + $0x1a0] ss:$16 sps:$4 sm:$0xff]   ;;  %v3496_v57 = vld [vmem:[%s4848_s2 + $0x1a8] ss:$16 sps:$4 sm:$0xff]  }
  0x14   :  { %1240 = vmatprep.subr.bf16.mxu0 %v2880_v20  ;;  %1363 = vmatprep.subr.bf16.mxu1 %v2882_v21  ;;  %v3503_v58 = vld [vmem:[%s4848_s2 + $0x1c4] ss:$16 sps:$4 sm:$0xff]   ;;  %v3508_v59 = vld [vmem:[%s4848_s2 + $0x1cc] ss:$16 sps:$4 sm:$0xff]   ;;  %v3515_v60 = vld [vmem:[%s4848_s2 + $0x1c0] ss:$16 sps:$4 sm:$0xff]  }
  0x15   :  { %1262 = vmatprep.mubr.bf16.mxu0 %v39_v48  ;;  %1385 = vmatprep.mubr.bf16.mxu1 %v39_v48  ;;  %v3520_v61 = vld [vmem:[%s4848_s2 + $0x1c8] ss:$16 sps:$4 sm:$0xff]   ;;  %v3527_v62 = vld [vmem:[%s4848_s2 + $0x1e4] ss:$16 sps:$4 sm:$0xff]   ;;  %v3532_v63 = vld [vmem:[%s4848_s2 + $0x1ec] ss:$16 sps:$4 sm:$0xff]  }
  0x16   :  { %v3537_v0 = vld [vmem:[%s4848_s2 + $0x1e0] ss:$16 sps:$4 sm:$0xff]   ;;  %v3544_v1 = vld [vmem:[%s4848_s2 + $0x1e8] ss:$16 sps:$4 sm:$0xff]   ;;  %v3554_v3 = vld [vmem:[%s4848_s2 + $0x204] ss:$16 sps:$4 sm:$0xff]  }
  0x17   :  { %1241 = vmatpush1.bf16.msra.mxu0 %v2884_v22  ;;  %1364 = vmatpush1.bf16.msra.mxu1 %v2885_v23  ;;  %v32_v2 = vld [vmem:[%s4849_s0] sm:$0xff]  ;;  %v3559_v4 = vld [vmem:[%s4848_s2 + $0x20c] ss:$16 sps:$4 sm:$0xff]   ;;  %v3571_v7 = vld [vmem:[%s4848_s2 + $0x208] ss:$16 sps:$4 sm:$0xff]  }
  0x18   :  { %1242 = vmatprep.subr.bf16.mxu0 %v2886_v24  ;;  %1365 = vmatprep.subr.bf16.mxu1 %v2888_v25  ;;  %v38_v5 = vpack.c.bf16 %v32_v2, %v32_v2  ;;  %v3566_v6 = vld [vmem:[%s4848_s2 + $0x200] ss:$16 sps:$4 sm:$0xff]   ;;  %v3578_v8 = vld [vmem:[%s4848_s2 + $0x224] ss:$16 sps:$4 sm:$0xff]   ;;  %v3583_v9 = vld [vmem:[%s4848_s2 + $0x22c] ss:$16 sps:$4 sm:$0xff]  }
  0x19   :  { %v3590_v10 = vld [vmem:[%s4848_s2 + $0x220] ss:$16 sps:$4 sm:$0xff]   ;;  %v3595_v11 = vld [vmem:[%s4848_s2 + $0x228] ss:$16 sps:$4 sm:$0xff]   ;;  %v3602_v12 = vld [vmem:[%s4848_s2 + $0x244] ss:$16 sps:$4 sm:$0xff]  }
  0x1a   :  { %v3607_v13 = vld [vmem:[%s4848_s2 + $0x24c] ss:$16 sps:$4 sm:$0xff]   ;;  %v3614_v14 = vld [vmem:[%s4848_s2 + $0x240] ss:$16 sps:$4 sm:$0xff]   ;;  %v3619_v15 = vld [vmem:[%s4848_s2 + $0x248] ss:$16 sps:$4 sm:$0xff]  }
  0x1b   :  { %1243 = vmatpush1.bf16.msra.mxu0 %v2890_v26  ;;  %1366 = vmatpush1.bf16.msra.mxu1 %v2891_v27  ;;  %v3626_v16 = vld [vmem:[%s4848_s2 + $0x264] ss:$16 sps:$4 sm:$0xff]   ;;  %v3631_v17 = vld [vmem:[%s4848_s2 + $0x26c] ss:$16 sps:$4 sm:$0xff]   ;;  %v3638_v18 = vld [vmem:[%s4848_s2 + $0x260] ss:$16 sps:$4 sm:$0xff]  }
  0x1c   :  { %1244 = vmatprep.subr.bf16.mxu0 %v2892_v28  ;;  %1367 = vmatprep.subr.bf16.mxu1 %v2894_v29  ;;  %v3643_v19 = vld [vmem:[%s4848_s2 + $0x268] ss:$16 sps:$4 sm:$0xff]   ;;  %v3650_v20 = vld [vmem:[%s4848_s2 + $0x284] ss:$16 sps:$4 sm:$0xff]   ;;  %v3655_v21 = vld [vmem:[%s4848_s2 + $0x28c] ss:$16 sps:$4 sm:$0xff]  }
  0x1d   :  { %v3662_v22 = vld [vmem:[%s4848_s2 + $0x280] ss:$16 sps:$4 sm:$0xff]   ;;  %v3667_v23 = vld [vmem:[%s4848_s2 + $0x288] ss:$16 sps:$4 sm:$0xff]   ;;  %v3674_v24 = vld [vmem:[%s4848_s2 + $0x2a4] ss:$16 sps:$4 sm:$0xff]  }
  0x1e   :  { %v3679_v25 = vld [vmem:[%s4848_s2 + $0x2ac] ss:$16 sps:$4 sm:$0xff]   ;;  %v3686_v26 = vld [vmem:[%s4848_s2 + $0x2a0] ss:$16 sps:$4 sm:$0xff]   ;;  %v3691_v27 = vld [vmem:[%s4848_s2 + $0x2a8] ss:$16 sps:$4 sm:$0xff]  }
  0x1f   :  { %1245 = vmatpush1.bf16.msra.mxu0 %v2896_v30  ;;  %1368 = vmatpush1.bf16.msra.mxu1 %v2897_v31  ;;  %v3698_v28 = vld [vmem:[%s4848_s2 + $0x2c4] ss:$16 sps:$4 sm:$0xff]   ;;  %v3703_v29 = vld [vmem:[%s4848_s2 + $0x2cc] ss:$16 sps:$4 sm:$0xff]   ;;  %v3711_v31 = vld [vmem:[%s4848_s2 + $0x2c0] ss:$16 sps:$4 sm:$0xff]  }
  0x20   :  { %1246 = vmatprep.subr.bf16.mxu0 %v2898_v32  ;;  %1369 = vmatprep.subr.bf16.mxu1 %v2900_v33  ;;  %v35_v30 = vld [vmem:[%s4849_s0 + $0x18] sm:$0xff]  ;;  %v3771_v46 = vld [vmem:[%s4848_s2 + $0x324] ss:$16 sps:$4 sm:$0xff]   ;;  %v3783_v2 = vld [vmem:[%s4848_s2 + $0x320] ss:$16 sps:$4 sm:$0xff]  }
  0x21   :  { %v41_v32 = vpack.c.bf16 %v35_v30, %v35_v30  ;;  %v3718_v33 = vld [vmem:[%s4848_s2 + $0x2c8] ss:$16 sps:$4 sm:$0xff]   ;;  %4954 = vst [vmem:[#allocation7_spill] sm:$0xff] %v3771_v46  ;;  %v3778_v48 = vld [vmem:[%s4848_s2 + $0x32c] ss:$16 sps:$4 sm:$0xff]   ;;  %4956 = vst [vmem:[#allocation9_spill] sm:$0xff] %v3783_v2 }
  0x22   :  { %4955 = vst [vmem:[#allocation8_spill] sm:$0xff] %v3778_v48  ;;  %v3795_v30 = vld [vmem:[%s4848_s2 + $0x344] ss:$16 sps:$4 sm:$0xff]  }
  0x23   :  { %1247 = vmatpush1.bf16.msra.mxu0 %v2902_v34  ;;  %1370 = vmatpush1.bf16.msra.mxu1 %v2903_v35  ;;  %v3723_v34 = vld [vmem:[%s4848_s2 + $0x2e4] ss:$16 sps:$4 sm:$0xff]   ;;  %v3730_v35 = vld [vmem:[%s4848_s2 + $0x2ec] ss:$16 sps:$4 sm:$0xff]   ;;  %4958 = vst [vmem:[#allocation11_spill] sm:$0xff] %v3795_v30 }
  0x24   :  { %1248 = vmatprep.subr.bf16.mxu0 %v2904_v36  ;;  %1371 = vmatprep.subr.bf16.mxu1 %v2906_v37  ;;  %v3735_v36 = vld [vmem:[%s4848_s2 + $0x2e0] ss:$16 sps:$4 sm:$0xff]   ;;  %v3740_v37 = vld [vmem:[%s4848_s2 + $0x2e8] ss:$16 sps:$4 sm:$0xff]  }
  0x27   :  { %1249 = vmatpush1.bf16.msra.mxu0 %v2908_v38  ;;  %1372 = vmatpush1.bf16.msra.mxu1 %v2909_v39  ;;  %v3747_v38 = vld [vmem:[%s4848_s2 + $0x304] ss:$16 sps:$4 sm:$0xff]   ;;  %v3754_v39 = vld [vmem:[%s4848_s2 + $0x30c] ss:$16 sps:$4 sm:$0xff]  }
  0x28   :  { %1250 = vmatprep.subr.bf16.mxu0 %v2910_v40  ;;  %1373 = vmatprep.subr.bf16.mxu1 %v2912_v41  ;;  %4950 = vst [vmem:[#allocation3_spill] sm:$0xff] %v3747_v38  ;;  %4951 = vst [vmem:[#allocation4_spill] sm:$0xff] %v3754_v39  ;;  %v3759_v40 = vld [vmem:[%s4848_s2 + $0x300] ss:$16 sps:$4 sm:$0xff]   ;;  %v3764_v41 = vld [vmem:[%s4848_s2 + $0x308] ss:$16 sps:$4 sm:$0xff]  }
  0x29   :  { %4952 = vst [vmem:[#allocation5_spill] sm:$0xff] %v3759_v40  ;;  %4953 = vst [vmem:[#allocation6_spill] sm:$0xff] %v3764_v41 }
  0x2b   :  { %1251 = vmatpush1.bf16.msra.mxu0 %v3418_v42  ;;  %1374 = vmatpush1.bf16.msra.mxu1 %v3423_v43 }
  0x2c   :  { %1252 = vmatprep.subr.bf16.mxu0 %v3428_v44  ;;  %1375 = vmatprep.subr.bf16.mxu1 %v3433_v45 }
  0x2f   :  { %1253 = vmatpush1.bf16.msra.mxu0 %v3441_v47  ;;  %1376 = vmatpush1.bf16.msra.mxu1 %v3448_v49 }
  0x30   :  { %1254 = vmatprep.subr.bf16.mxu0 %v3455_v50  ;;  %1377 = vmatprep.subr.bf16.mxu1 %v3460_v51 }
  0x33   :  { %1255 = vmatpush1.bf16.msra.mxu0 %v3467_v52  ;;  %1378 = vmatpush1.bf16.msra.mxu1 %v3472_v53 }
  0x34   :  { %1256 = vmatprep.subr.bf16.mxu0 %v3479_v54  ;;  %1379 = vmatprep.subr.bf16.mxu1 %v3484_v55 }
  0x37   :  { %1257 = vmatpush1.bf16.msra.mxu0 %v3491_v56  ;;  %1380 = vmatpush1.bf16.msra.mxu1 %v3496_v57 }
  0x38   :  { %1258 = vmatprep.subr.bf16.mxu0 %v3503_v58  ;;  %1381 = vmatprep.subr.bf16.mxu1 %v3508_v59 }
  0x3b   :  { %1259 = vmatpush1.bf16.msra.mxu0 %v3515_v60  ;;  %1382 = vmatpush1.bf16.msra.mxu1 %v3520_v61 }
  0x3c   :  { %1260 = vmatprep.subr.bf16.mxu0 %v3527_v62  ;;  %1383 = vmatprep.subr.bf16.mxu1 %v3532_v63 }
  0x3f   :  { %1261 = vmatpush1.bf16.msra.mxu0 %v3537_v0  ;;  %1384 = vmatpush1.bf16.msra.mxu1 %v3544_v1 }
  0x40   :  { %1271 = vmatprep.subr.bf16.mxu0 %v3554_v3  ;;  %1394 = vmatprep.subr.bf16.mxu1 %v3559_v4 }
  0x42   :  { %1263 = vmatmul.mubr.bf16.vlgmr.msra.gmra.mrb[0].mxu0 %v38_v5  ;;  %1386 = vmatmul.mubr.bf16.vlgmr.msra.gmra.mrb[0].mxu1 %v38_v5  ;;  %v3788_v5 = vld [vmem:[%s4848_s2 + $0x328] ss:$16 sps:$4 sm:$0xff]  }
  0x43   :  { %1272 = vmatpush1.bf16.msra.mxu0 %v3566_v6  ;;  %1395 = vmatpush1.bf16.msra.mxu1 %v3571_v7  ;;  %4957 = vst [vmem:[#allocation10_spill] sm:$0xff] %v3788_v5 }
  0x44   :  { %1273 = vmatprep.subr.bf16.mxu0 %v3578_v8  ;;  %1396 = vmatprep.subr.bf16.mxu1 %v3583_v9 }
  0x45   :  { %1303 = vmatprep.mubr.bf16.mxu0 %v41_v32  ;;  %1426 = vmatprep.mubr.bf16.mxu1 %v41_v32  ;;  %v3802_v32 = vld [vmem:[%s4848_s2 + $0x34c] ss:$16 sps:$4 sm:$0xff]  }
  0x46   :  { %4959 = vst [vmem:[#allocation12_spill] sm:$0xff] %v3802_v32 }
  0x47   :  { %1274 = vmatpush1.bf16.msra.mxu0 %v3590_v10  ;;  %1397 = vmatpush1.bf16.msra.mxu1 %v3595_v11 }
  0x48   :  { %1275 = vmatprep.subr.bf16.mxu0 %v3602_v12  ;;  %1398 = vmatprep.subr.bf16.mxu1 %v3607_v13 }
  0x4b   :  { %1276 = vmatpush1.bf16.msra.mxu0 %v3614_v14  ;;  %1399 = vmatpush1.bf16.msra.mxu1 %v3619_v15 }
  0x4c   :  { %1277 = vmatprep.subr.bf16.mxu0 %v3626_v16  ;;  %1400 = vmatprep.subr.bf16.mxu1 %v3631_v17 }
  0x4f   :  { %1278 = vmatpush1.bf16.msra.mxu0 %v3638_v18  ;;  %1401 = vmatpush1.bf16.msra.mxu1 %v3643_v19 }
  0x50   :  { %1279 = vmatprep.subr.bf16.mxu0 %v3650_v20  ;;  %1402 = vmatprep.subr.bf16.mxu1 %v3655_v21 }
  0x53   :  { %1280 = vmatpush1.bf16.msra.mxu0 %v3662_v22  ;;  %1403 = vmatpush1.bf16.msra.mxu1 %v3667_v23 }
  0x54   :  { %1281 = vmatprep.subr.bf16.mxu0 %v3674_v24  ;;  %1404 = vmatprep.subr.bf16.mxu1 %v3679_v25 }
  0x57   :  { %1282 = vmatpush1.bf16.msra.mxu0 %v3686_v26  ;;  %1405 = vmatpush1.bf16.msra.mxu1 %v3691_v27 }
  0x58   :  { %1283 = vmatprep.subr.bf16.mxu0 %v3698_v28  ;;  %1406 = vmatprep.subr.bf16.mxu1 %v3703_v29 }
  0x5b   :  { %1284 = vmatpush1.bf16.msra.mxu0 %v3711_v31  ;;  %1407 = vmatpush1.bf16.msra.mxu1 %v3718_v33 }
  0x5c   :  { %1285 = vmatprep.subr.bf16.mxu0 %v3723_v34  ;;  %1408 = vmatprep.subr.bf16.mxu1 %v3730_v35 }
  0x5f   :  { %1286 = vmatpush1.bf16.msra.mxu0 %v3735_v36  ;;  %1409 = vmatpush1.bf16.msra.mxu1 %v3740_v37 }
  0x60   :  { %1287 = vmatprep.subr.bf16.mxu0 %v3747_v38  ;;  %1410 = vmatprep.subr.bf16.mxu1 %v3754_v39  ;;  %v3949_v39 = vld [vmem:[%s4848_s2 + $0x40c] ss:$16 sps:$4 sm:$0xff]   ;;  %v3954_v38 = vld [vmem:[%s4848_s2 + $0x400] ss:$16 sps:$4 sm:$0xff]  }
  0x61   :  { %4982 = vst [vmem:[#allocation35_spill] sm:$0xff] %v3949_v39 }
  0x63   :  { %1288 = vmatpush1.bf16.msra.mxu0 %v3759_v40  ;;  %1411 = vmatpush1.bf16.msra.mxu1 %v3764_v41  ;;  %v3807_v40 = vld [vmem:[%s4848_s2 + $0x340] ss:$16 sps:$4 sm:$0xff]   ;;  %v3812_v41 = vld [vmem:[%s4848_s2 + $0x348] ss:$16 sps:$4 sm:$0xff]  }
  0x64   :  { %1289 = vmatprep.subr.bf16.mxu0 %v3771_v46  ;;  %1412 = vmatprep.subr.bf16.mxu1 %v3778_v48  ;;  %4960 = vst [vmem:[#allocation13_spill] sm:$0xff] %v3807_v40  ;;  %4961 = vst [vmem:[#allocation14_spill] sm:$0xff] %v3812_v41  ;;  %v3819_v48 = vld [vmem:[%s4848_s2 + $0x364] ss:$16 sps:$4 sm:$0xff]   ;;  %v3826_v46 = vld [vmem:[%s4848_s2 + $0x36c] ss:$16 sps:$4 sm:$0xff]  }
  0x65   :  { %4962 = vst [vmem:[#allocation15_spill] sm:$0xff] %v3819_v48  ;;  %4963 = vst [vmem:[#allocation16_spill] sm:$0xff] %v3826_v46 }
  0x67   :  { %1290 = vmatpush1.bf16.msra.mxu0 %v3783_v2  ;;  %1413 = vmatpush1.bf16.msra.mxu1 %v3788_v5  ;;  %v3831_v2 = vld [vmem:[%s4848_s2 + $0x360] ss:$16 sps:$4 sm:$0xff]   ;;  %v3836_v5 = vld [vmem:[%s4848_s2 + $0x368] ss:$16 sps:$4 sm:$0xff]  }
  0x68   :  { %1291 = vmatprep.subr.bf16.mxu0 %v3795_v30  ;;  %1414 = vmatprep.subr.bf16.mxu1 %v3802_v32  ;;  %4964 = vst [vmem:[#allocation17_spill] sm:$0xff] %v3831_v2  ;;  %4965 = vst [vmem:[#allocation18_spill] sm:$0xff] %v3836_v5  ;;  %v3843_v32 = vld [vmem:[%s4848_s2 + $0x384] ss:$16 sps:$4 sm:$0xff]   ;;  %v3850_v30 = vld [vmem:[%s4848_s2 + $0x38c] ss:$16 sps:$4 sm:$0xff]  }
  0x69   :  { %4966 = vst [vmem:[#allocation19_spill] sm:$0xff] %v3843_v32  ;;  %4967 = vst [vmem:[#allocation20_spill] sm:$0xff] %v3850_v30 }
  0x6b   :  { %1292 = vmatpush1.bf16.msra.mxu0 %v3807_v40  ;;  %1415 = vmatpush1.bf16.msra.mxu1 %v3812_v41  ;;  %v3855_v40 = vld [vmem:[%s4848_s2 + $0x380] ss:$16 sps:$4 sm:$0xff]   ;;  %v3860_v41 = vld [vmem:[%s4848_s2 + $0x388] ss:$16 sps:$4 sm:$0xff]  }
  0x6c   :  { %1293 = vmatprep.subr.bf16.mxu0 %v3819_v48  ;;  %1416 = vmatprep.subr.bf16.mxu1 %v3826_v46  ;;  %4968 = vst [vmem:[#allocation21_spill] sm:$0xff] %v3855_v40  ;;  %4969 = vst [vmem:[#allocation22_spill] sm:$0xff] %v3860_v41  ;;  %v3867_v46 = vld [vmem:[%s4848_s2 + $0x3a4] ss:$16 sps:$4 sm:$0xff]   ;;  %v3874_v48 = vld [vmem:[%s4848_s2 + $0x3ac] ss:$16 sps:$4 sm:$0xff]  }
  0x6d   :  { %4970 = vst [vmem:[#allocation23_spill] sm:$0xff] %v3867_v46  ;;  %4971 = vst [vmem:[#allocation24_spill] sm:$0xff] %v3874_v48 }
  0x6f   :  { %1294 = vmatpush1.bf16.msra.mxu0 %v3831_v2  ;;  %1417 = vmatpush1.bf16.msra.mxu1 %v3836_v5  ;;  %v3879_v2 = vld [vmem:[%s4848_s2 + $0x3a0] ss:$16 sps:$4 sm:$0xff]   ;;  %v3884_v5 = vld [vmem:[%s4848_s2 + $0x3a8] ss:$16 sps:$4 sm:$0xff]  }
  0x70   :  { %1295 = vmatprep.subr.bf16.mxu0 %v3843_v32  ;;  %1418 = vmatprep.subr.bf16.mxu1 %v3850_v30  ;;  %4972 = vst [vmem:[#allocation25_spill] sm:$0xff] %v3879_v2  ;;  %4973 = vst [vmem:[#allocation26_spill] sm:$0xff] %v3884_v5  ;;  %v3891_v30 = vld [vmem:[%s4848_s2 + $0x3c4] ss:$16 sps:$4 sm:$0xff]   ;;  %v3898_v32 = vld [vmem:[%s4848_s2 + $0x3cc] ss:$16 sps:$4 sm:$0xff]  }
  0x71   :  { %4974 = vst [vmem:[#allocation27_spill] sm:$0xff] %v3891_v30  ;;  %4975 = vst [vmem:[#allocation28_spill] sm:$0xff] %v3898_v32 }
  0x73   :  { %1296 = vmatpush1.bf16.msra.mxu0 %v3855_v40  ;;  %1419 = vmatpush1.bf16.msra.mxu1 %v3860_v41  ;;  %v3903_v40 = vld [vmem:[%s4848_s2 + $0x3c0] ss:$16 sps:$4 sm:$0xff]   ;;  %v3908_v41 = vld [vmem:[%s4848_s2 + $0x3c8] ss:$16 sps:$4 sm:$0xff]  }
  0x74   :  { %1297 = vmatprep.subr.bf16.mxu0 %v3867_v46  ;;  %1420 = vmatprep.subr.bf16.mxu1 %v3874_v48  ;;  %4976 = vst [vmem:[#allocation29_spill] sm:$0xff] %v3903_v40  ;;  %v3915_v48 = vld [vmem:[%s4848_s2 + $0x3e4] ss:$16 sps:$4 sm:$0xff]   ;;  %v3922_v46 = vld [vmem:[%s4848_s2 + $0x3ec] ss:$16 sps:$4 sm:$0xff]  }
  0x75   :  { %4977 = vst [vmem:[#allocation30_spill] sm:$0xff] %v3915_v48  ;;  %4978 = vst [vmem:[#allocation31_spill] sm:$0xff] %v3922_v46 }
  0x77   :  { %1298 = vmatpush1.bf16.msra.mxu0 %v3879_v2  ;;  %1421 = vmatpush1.bf16.msra.mxu1 %v3884_v5  ;;  %v3927_v2 = vld [vmem:[%s4848_s2 + $0x3e0] ss:$16 sps:$4 sm:$0xff]   ;;  %v3932_v5 = vld [vmem:[%s4848_s2 + $0x3e8] ss:$16 sps:$4 sm:$0xff]  }
  0x78   :  { %1299 = vmatprep.subr.bf16.mxu0 %v3891_v30  ;;  %1422 = vmatprep.subr.bf16.mxu1 %v3898_v32  ;;  %4979 = vst [vmem:[#allocation32_spill] sm:$0xff] %v3927_v2  ;;  %4980 = vst [vmem:[#allocation33_spill] sm:$0xff] %v3932_v5  ;;  %v3937_v30 = vld [vmem:[%s4848_s2 + $0x404] ss:$16 sps:$4 sm:$0xff]  }
  0x79   :  { %4981 = vst [vmem:[#allocation34_spill] sm:$0xff] %v3937_v30  ;;  %v34_v32 = vld [vmem:[%s4849_s0 + $0x10] sm:$0xff] }
  0x7b   :  { %1300 = vmatpush1.bf16.msra.mxu0 %v3903_v40  ;;  %1423 = vmatpush1.bf16.msra.mxu1 %v3908_v41  ;;  %v40_v40 = vpack.c.bf16 %v34_v32, %v34_v32  ;;  %v3973_v32 = vld [vmem:[%s4848_s2 + $0x42c] ss:$16 sps:$4 sm:$0xff]  }
  0x7c   :  { %1301 = vmatprep.subr.bf16.mxu0 %v3915_v48  ;;  %1424 = vmatprep.subr.bf16.mxu1 %v3922_v46  ;;  %v3961_v48 = vld [vmem:[%s4848_s2 + $0x408] ss:$16 sps:$4 sm:$0xff]   ;;  %v3968_v46 = vld [vmem:[%s4848_s2 + $0x424] ss:$16 sps:$4 sm:$0xff]   ;;  %4985 = vst [vmem:[#allocation38_spill] sm:$0xff] %v3973_v32 }
  0x7d   :  { %4983 = vst [vmem:[#allocation36_spill] sm:$0xff] %v3961_v48  ;;  %4984 = vst [vmem:[#allocation37_spill] sm:$0xff] %v3968_v46 }
  0x7f   :  { %1302 = vmatpush1.bf16.msra.mxu0 %v3927_v2  ;;  %1425 = vmatpush1.bf16.msra.mxu1 %v3932_v5  ;;  %v37_v5 = vld [vmem:[%s4849_s0 + $0x28] sm:$0xff] }
  0x80   :  { %1312 = vmatprep.subr.bf16.mxu0 %v3937_v30  ;;  %1435 = vmatprep.subr.bf16.mxu1 %v3949_v39  ;;  %v43_v2 = vpack.c.bf16 %v37_v5, %v37_v5  ;;  %v3983_v39 = vld [vmem:[%s4848_s2 + $0x420] ss:$16 sps:$4 sm:$0xff]   ;;  %v3988_v30 = vld [vmem:[%s4848_s2 + $0x428] ss:$16 sps:$4 sm:$0xff]   ;;  %v4000_v5 = vld [vmem:[%s4848_s2 + $0x44c] ss:$16 sps:$4 sm:$0xff]  }
  0x81   :  { %4986 = vst [vmem:[#allocation39_spill] sm:$0xff] %v3983_v39  ;;  %4987 = vst [vmem:[#allocation40_spill] sm:$0xff] %v3988_v30 }
  0x82   :  { %1304 = vmatmul.mubr.bf16.vlgmr.msra.gmra.mrb[0].mxu0 %v40_v40  ;;  %1427 = vmatmul.mubr.bf16.vlgmr.msra.gmra.mrb[0].mxu1 %v40_v40  ;;  %v3995_v40 = vld [vmem:[%s4848_s2 + $0x444] ss:$16 sps:$4 sm:$0xff]   ;;  %4989 = vst [vmem:[#allocation42_spill] sm:$0xff] %v4000_v5 }
  0x83   :  { %1313 = vmatpush1.bf16.msra.mxu0 %v3954_v38  ;;  %1436 = vmatpush1.bf16.msra.mxu1 %v3961_v48  ;;  %4988 = vst [vmem:[#allocation41_spill] sm:$0xff] %v3995_v40  ;;  %v3202_v48 = vld [vmem:[%s4848_s2 + $0x4] ss:$16 sps:$4 sm:$0xff]  }
  0x84   :  { %1314 = vmatprep.subr.bf16.mxu0 %v3968_v46  ;;  %1437 = vmatprep.subr.bf16.mxu1 %v3973_v32  ;;  %v4007_v32 = vld [vmem:[%s4848_s2 + $0x440] ss:$16 sps:$4 sm:$0xff]   ;;  %v4012_v46 = vld [vmem:[%s4848_s2 + $0x448] ss:$16 sps:$4 sm:$0xff]  }
  0x85   :  { %1344 = vmatprep.mubr.bf16.mxu0 %v43_v2  ;;  %1467 = vmatprep.mubr.bf16.mxu1 %v43_v2  ;;  %4990 = vst [vmem:[#allocation43_spill] sm:$0xff] %v4007_v32  ;;  %4991 = vst [vmem:[#allocation44_spill] sm:$0xff] %v4012_v46  ;;  %v4019_v2 = vld [vmem:[%s4848_s2 + $0x464] ss:$16 sps:$4 sm:$0xff]  }
  0x86   :  { %4992 = vst [vmem:[#allocation45_spill] sm:$0xff] %v4019_v2 }
  0x87   :  { %1315 = vmatpush1.bf16.msra.mxu0 %v3983_v39  ;;  %1438 = vmatpush1.bf16.msra.mxu1 %v3988_v30  ;;  %v4024_v30 = vld [vmem:[%s4848_s2 + $0x46c] ss:$16 sps:$4 sm:$0xff]   ;;  %v36_v39 = vld [vmem:[%s4849_s0 + $0x20] sm:$0xff] }
  0x88   :  { %1316 = vmatprep.subr.bf16.mxu0 %v3995_v40  ;;  %1439 = vmatprep.subr.bf16.mxu1 %v4000_v5  ;;  %4993 = vst [vmem:[#allocation46_spill] sm:$0xff] %v4024_v30  ;;  %v4031_v40 = vld [vmem:[%s4848_s2 + $0x460] ss:$16 sps:$4 sm:$0xff]   ;;  %v4036_v5 = vld [vmem:[%s4848_s2 + $0x468] ss:$16 sps:$4 sm:$0xff]  }
  0x89   :  { %4994 = vst [vmem:[#allocation47_spill] sm:$0xff] %v4031_v40  ;;  %4995 = vst [vmem:[#allocation48_spill] sm:$0xff] %v4036_v5 }
  0x8b   :  { %1317 = vmatpush1.bf16.msra.mxu0 %v4007_v32  ;;  %1440 = vmatpush1.bf16.msra.mxu1 %v4012_v46  ;;  %v4043_v32 = vld [vmem:[%s4848_s2 + $0x484] ss:$16 sps:$4 sm:$0xff]   ;;  %v4048_v46 = vld [vmem:[%s4848_s2 + $0x48c] ss:$16 sps:$4 sm:$0xff]  }
  0x8c   :  { %1318 = vmatprep.subr.bf16.mxu0 %v4019_v2  ;;  %1441 = vmatprep.subr.bf16.mxu1 %v4024_v30  ;;  %4996 = vst [vmem:[#allocation49_spill] sm:$0xff] %v4043_v32  ;;  %4997 = vst [vmem:[#allocation50_spill] sm:$0xff] %v4048_v46  ;;  %v4055_v2 = vld [vmem:[%s4848_s2 + $0x480] ss:$16 sps:$4 sm:$0xff]   ;;  %v4060_v30 = vld [vmem:[%s4848_s2 + $0x488] ss:$16 sps:$4 sm:$0xff]  }
  0x8d   :  { %4998 = vst [vmem:[#allocation51_spill] sm:$0xff] %v4055_v2  ;;  %4999 = vst [vmem:[#allocation52_spill] sm:$0xff] %v4060_v30 }
  0x8f   :  { %1319 = vmatpush1.bf16.msra.mxu0 %v4031_v40  ;;  %1442 = vmatpush1.bf16.msra.mxu1 %v4036_v5  ;;  %v4067_v40 = vld [vmem:[%s4848_s2 + $0x4a4] ss:$16 sps:$4 sm:$0xff]   ;;  %v4072_v5 = vld [vmem:[%s4848_s2 + $0x4ac] ss:$16 sps:$4 sm:$0xff]  }
  0x90   :  { %1320 = vmatprep.subr.bf16.mxu0 %v4043_v32  ;;  %1443 = vmatprep.subr.bf16.mxu1 %v4048_v46  ;;  %5000 = vst [vmem:[#allocation53_spill] sm:$0xff] %v4067_v40  ;;  %5001 = vst [vmem:[#allocation54_spill] sm:$0xff] %v4072_v5  ;;  %v4079_v32 = vld [vmem:[%s4848_s2 + $0x4a0] ss:$16 sps:$4 sm:$0xff]   ;;  %v4084_v46 = vld [vmem:[%s4848_s2 + $0x4a8] ss:$16 sps:$4 sm:$0xff]  }
  0x91   :  { %5002 = vst [vmem:[#allocation55_spill] sm:$0xff] %v4079_v32  ;;  %5003 = vst [vmem:[#allocation56_spill] sm:$0xff] %v4084_v46 }
  0x93   :  { %1321 = vmatpush1.bf16.msra.mxu0 %v4055_v2  ;;  %1444 = vmatpush1.bf16.msra.mxu1 %v4060_v30  ;;  %v4091_v2 = vld [vmem:[%s4848_s2 + $0x4c4] ss:$16 sps:$4 sm:$0xff]   ;;  %v4096_v30 = vld [vmem:[%s4848_s2 + $0x4cc] ss:$16 sps:$4 sm:$0xff]  }
  0x94   :  { %1322 = vmatprep.subr.bf16.mxu0 %v4067_v40  ;;  %1445 = vmatprep.subr.bf16.mxu1 %v4072_v5  ;;  %5004 = vst [vmem:[#allocation57_spill] sm:$0xff] %v4091_v2  ;;  %5005 = vst [vmem:[#allocation58_spill] sm:$0xff] %v4096_v30  ;;  %v4103_v40 = vld [vmem:[%s4848_s2 + $0x4c0] ss:$16 sps:$4 sm:$0xff]   ;;  %v4108_v5 = vld [vmem:[%s4848_s2 + $0x4c8] ss:$16 sps:$4 sm:$0xff]  }
  0x95   :  { %5006 = vst [vmem:[#allocation59_spill] sm:$0xff] %v4103_v40  ;;  %5007 = vst [vmem:[#allocation60_spill] sm:$0xff] %v4108_v5 }
  0x97   :  { %1323 = vmatpush1.bf16.msra.mxu0 %v4079_v32  ;;  %1446 = vmatpush1.bf16.msra.mxu1 %v4084_v46  ;;  %v4115_v32 = vld [vmem:[%s4848_s2 + $0x4e4] ss:$16 sps:$4 sm:$0xff]   ;;  %v4120_v46 = vld [vmem:[%s4848_s2 + $0x4ec] ss:$16 sps:$4 sm:$0xff]  }
  0x98   :  { %1324 = vmatprep.subr.bf16.mxu0 %v4091_v2  ;;  %1447 = vmatprep.subr.bf16.mxu1 %v4096_v30  ;;  %5008 = vst [vmem:[#allocation61_spill] sm:$0xff] %v4115_v32  ;;  %5009 = vst [vmem:[#allocation62_spill] sm:$0xff] %v4120_v46  ;;  %v4127_v2 = vld [vmem:[%s4848_s2 + $0x4e0] ss:$16 sps:$4 sm:$0xff]   ;;  %v4132_v30 = vld [vmem:[%s4848_s2 + $0x4e8] ss:$16 sps:$4 sm:$0xff]  }
  0x99   :  { %5010 = vst [vmem:[#allocation63_spill] sm:$0xff] %v4127_v2  ;;  %5011 = vst [vmem:[#allocation64_spill] sm:$0xff] %v4132_v30 }
  0x9b   :  { %1325 = vmatpush1.bf16.msra.mxu0 %v4103_v40  ;;  %1448 = vmatpush1.bf16.msra.mxu1 %v4108_v5  ;;  %v4139_v40 = vld [vmem:[%s4848_s2 + $0x504] ss:$16 sps:$4 sm:$0xff]   ;;  %v4144_v5 = vld [vmem:[%s4848_s2 + $0x50c] ss:$16 sps:$4 sm:$0xff]  }
  0x9c   :  { %1326 = vmatprep.subr.bf16.mxu0 %v4115_v32  ;;  %1449 = vmatprep.subr.bf16.mxu1 %v4120_v46  ;;  %5012 = vst [vmem:[#allocation65_spill] sm:$0xff] %v4139_v40  ;;  %5013 = vst [vmem:[#allocation66_spill] sm:$0xff] %v4144_v5  ;;  %v4151_v32 = vld [vmem:[%s4848_s2 + $0x500] ss:$16 sps:$4 sm:$0xff]   ;;  %v4156_v46 = vld [vmem:[%s4848_s2 + $0x508] ss:$16 sps:$4 sm:$0xff]  }
  0x9d   :  { %5014 = vst [vmem:[#allocation67_spill] sm:$0xff] %v4151_v32  ;;  %5015 = vst [vmem:[#allocation68_spill] sm:$0xff] %v4156_v46 }
  0x9f   :  { %1327 = vmatpush1.bf16.msra.mxu0 %v4127_v2  ;;  %1450 = vmatpush1.bf16.msra.mxu1 %v4132_v30  ;;  %v4163_v2 = vld [vmem:[%s4848_s2 + $0x524] ss:$16 sps:$4 sm:$0xff]   ;;  %v4168_v30 = vld [vmem:[%s4848_s2 + $0x52c] ss:$16 sps:$4 sm:$0xff]  }
  0xa0   :  { %1328 = vmatprep.subr.bf16.mxu0 %v4139_v40  ;;  %1451 = vmatprep.subr.bf16.mxu1 %v4144_v5  ;;  %5016 = vst [vmem:[#allocation69_spill] sm:$0xff] %v4163_v2  ;;  %5017 = vst [vmem:[#allocation70_spill] sm:$0xff] %v4168_v30  ;;  %v4175_v40 = vld [vmem:[%s4848_s2 + $0x520] ss:$16 sps:$4 sm:$0xff]   ;;  %v4180_v5 = vld [vmem:[%s4848_s2 + $0x528] ss:$16 sps:$4 sm:$0xff]  }
  0xa1   :  { %5018 = vst [vmem:[#allocation71_spill] sm:$0xff] %v4175_v40  ;;  %5019 = vst [vmem:[#allocation72_spill] sm:$0xff] %v4180_v5 }
  0xa3   :  { %1329 = vmatpush1.bf16.msra.mxu0 %v4151_v32  ;;  %1452 = vmatpush1.bf16.msra.mxu1 %v4156_v46  ;;  %v4187_v32 = vld [vmem:[%s4848_s2 + $0x544] ss:$16 sps:$4 sm:$0xff]   ;;  %v4192_v46 = vld [vmem:[%s4848_s2 + $0x54c] ss:$16 sps:$4 sm:$0xff]  }
  0xa4   :  { %1330 = vmatprep.subr.bf16.mxu0 %v4163_v2  ;;  %1453 = vmatprep.subr.bf16.mxu1 %v4168_v30  ;;  %5020 = vst [vmem:[#allocation73_spill] sm:$0xff] %v4187_v32  ;;  %5021 = vst [vmem:[#allocation74_spill] sm:$0xff] %v4192_v46  ;;  %v4199_v2 = vld [vmem:[%s4848_s2 + $0x540] ss:$16 sps:$4 sm:$0xff]   ;;  %v4204_v30 = vld [vmem:[%s4848_s2 + $0x548] ss:$16 sps:$4 sm:$0xff]  }
  0xa5   :  { %5022 = vst [vmem:[#allocation75_spill] sm:$0xff] %v4199_v2  ;;  %5023 = vst [vmem:[#allocation76_spill] sm:$0xff] %v4204_v30 }
  0xa7   :  { %1331 = vmatpush1.bf16.msra.mxu0 %v4175_v40  ;;  %1454 = vmatpush1.bf16.msra.mxu1 %v4180_v5  ;;  %v4211_v40 = vld [vmem:[%s4848_s2 + $0x564] ss:$16 sps:$4 sm:$0xff]   ;;  %v4216_v5 = vld [vmem:[%s4848_s2 + $0x56c] ss:$16 sps:$4 sm:$0xff]  }
  0xa8   :  { %1332 = vmatprep.subr.bf16.mxu0 %v4187_v32  ;;  %1455 = vmatprep.subr.bf16.mxu1 %v4192_v46  ;;  %5024 = vst [vmem:[#allocation77_spill] sm:$0xff] %v4211_v40  ;;  %5025 = vst [vmem:[#allocation78_spill] sm:$0xff] %v4216_v5  ;;  %v4223_v32 = vld [vmem:[%s4848_s2 + $0x560] ss:$16 sps:$4 sm:$0xff]   ;;  %v4228_v46 = vld [vmem:[%s4848_s2 + $0x568] ss:$16 sps:$4 sm:$0xff]  }
  0xa9   :  { %5026 = vst [vmem:[#allocation79_spill] sm:$0xff] %v4223_v32  ;;  %5027 = vst [vmem:[#allocation80_spill] sm:$0xff] %v4228_v46 }
  0xab   :  { %1333 = vmatpush1.bf16.msra.mxu0 %v4199_v2  ;;  %1456 = vmatpush1.bf16.msra.mxu1 %v4204_v30  ;;  %v4235_v2 = vld [vmem:[%s4848_s2 + $0x584] ss:$16 sps:$4 sm:$0xff]   ;;  %v4240_v30 = vld [vmem:[%s4848_s2 + $0x58c] ss:$16 sps:$4 sm:$0xff]  }
  0xac   :  { %1334 = vmatprep.subr.bf16.mxu0 %v4211_v40  ;;  %1457 = vmatprep.subr.bf16.mxu1 %v4216_v5  ;;  %5028 = vst [vmem:[#allocation81_spill] sm:$0xff] %v4235_v2  ;;  %5029 = vst [vmem:[#allocation82_spill] sm:$0xff] %v4240_v30  ;;  %v4247_v40 = vld [vmem:[%s4848_s2 + $0x580] ss:$16 sps:$4 sm:$0xff]   ;;  %v4252_v5 = vld [vmem:[%s4848_s2 + $0x588] ss:$16 sps:$4 sm:$0xff]  }
  0xad   :  { %5030 = vst [vmem:[#allocation83_spill] sm:$0xff] %v4247_v40  ;;  %5031 = vst [vmem:[#allocation84_spill] sm:$0xff] %v4252_v5 }
  0xaf   :  { %1335 = vmatpush1.bf16.msra.mxu0 %v4223_v32  ;;  %1458 = vmatpush1.bf16.msra.mxu1 %v4228_v46  ;;  %v4259_v32 = vld [vmem:[%s4848_s2 + $0x5a4] ss:$16 sps:$4 sm:$0xff]   ;;  %v4264_v46 = vld [vmem:[%s4848_s2 + $0x5ac] ss:$16 sps:$4 sm:$0xff]  }
  0xb0   :  { %1336 = vmatprep.subr.bf16.mxu0 %v4235_v2  ;;  %1459 = vmatprep.subr.bf16.mxu1 %v4240_v30  ;;  %5032 = vst [vmem:[#allocation85_spill] sm:$0xff] %v4259_v32  ;;  %5033 = vst [vmem:[#allocation86_spill] sm:$0xff] %v4264_v46  ;;  %v4271_v2 = vld [vmem:[%s4848_s2 + $0x5a0] ss:$16 sps:$4 sm:$0xff]   ;;  %v4276_v30 = vld [vmem:[%s4848_s2 + $0x5a8] ss:$16 sps:$4 sm:$0xff]  }
  0xb1   :  { %5034 = vst [vmem:[#allocation87_spill] sm:$0xff] %v4271_v2  ;;  %5035 = vst [vmem:[#allocation88_spill] sm:$0xff] %v4276_v30 }
  0xb3   :  { %1337 = vmatpush1.bf16.msra.mxu0 %v4247_v40  ;;  %1460 = vmatpush1.bf16.msra.mxu1 %v4252_v5  ;;  %v4283_v40 = vld [vmem:[%s4848_s2 + $0x5c4] ss:$16 sps:$4 sm:$0xff]   ;;  %v4288_v5 = vld [vmem:[%s4848_s2 + $0x5cc] ss:$16 sps:$4 sm:$0xff]  }
  0xb4   :  { %1338 = vmatprep.subr.bf16.mxu0 %v4259_v32  ;;  %1461 = vmatprep.subr.bf16.mxu1 %v4264_v46  ;;  %5036 = vst [vmem:[#allocation89_spill] sm:$0xff] %v4283_v40  ;;  %5037 = vst [vmem:[#allocation90_spill] sm:$0xff] %v4288_v5  ;;  %v4295_v32 = vld [vmem:[%s4848_s2 + $0x5c0] ss:$16 sps:$4 sm:$0xff]   ;;  %v4300_v46 = vld [vmem:[%s4848_s2 + $0x5c8] ss:$16 sps:$4 sm:$0xff]  }
  0xb5   :  { %5038 = vst [vmem:[#allocation91_spill] sm:$0xff] %v4295_v32  ;;  %5039 = vst [vmem:[#allocation92_spill] sm:$0xff] %v4300_v46 }
  0xb7   :  { %1339 = vmatpush1.bf16.msra.mxu0 %v4271_v2  ;;  %1462 = vmatpush1.bf16.msra.mxu1 %v4276_v30  ;;  %v4307_v2 = vld [vmem:[%s4848_s2 + $0x5e4] ss:$16 sps:$4 sm:$0xff]   ;;  %v4312_v30 = vld [vmem:[%s4848_s2 + $0x5ec] ss:$16 sps:$4 sm:$0xff]  }
  0xb8   :  { %1340 = vmatprep.subr.bf16.mxu0 %v4283_v40  ;;  %1463 = vmatprep.subr.bf16.mxu1 %v4288_v5  ;;  %5040 = vst [vmem:[#allocation93_spill] sm:$0xff] %v4307_v2  ;;  %5041 = vst [vmem:[#allocation94_spill] sm:$0xff] %v4312_v30  ;;  %v4319_v40 = vld [vmem:[%s4848_s2 + $0x5e0] ss:$16 sps:$4 sm:$0xff]   ;;  %v4324_v5 = vld [vmem:[%s4848_s2 + $0x5e8] ss:$16 sps:$4 sm:$0xff]  }
  0xb9   :  { %5042 = vst [vmem:[#allocation95_spill] sm:$0xff] %v4324_v5 }
  0xbb   :  { %1341 = vmatpush1.bf16.msra.mxu0 %v4295_v32  ;;  %1464 = vmatpush1.bf16.msra.mxu1 %v4300_v46  ;;  %v42_v32 = vpack.c.bf16 %v36_v39, %v36_v39  ;;  %v45_v46 = vld [vmem:[%s4850_s1 + $0x8] sm:$0xff]  ;;  %v3204_v39 = vld [vmem:[%s4848_s2] ss:$16 sps:$4 sm:$0xff]  }
  0xbc   :  { %1342 = vmatprep.subr.bf16.mxu0 %v4307_v2  ;;  %1465 = vmatprep.subr.bf16.mxu1 %v4312_v30  ;;  %v3203_v2 = vld [vmem:[%s4848_s2 + $0xc] ss:$16 sps:$4 sm:$0xff]   ;;  %v51_v30 = vpack.c.bf16 %v45_v46, %v45_v46 }
  0xbd   :  { %v3207_v46 = vld [vmem:[%s4848_s2 + $0x2c] ss:$16 sps:$4 sm:$0xff]  }
  0xbf   :  { %1343 = vmatpush1.bf16.msra.mxu0 %v4319_v40  ;;  %1466 = vmatpush1.bf16.msra.mxu1 %v4324_v5  ;;  %v3205_v5 = vld [vmem:[%s4848_s2 + $0x8] ss:$16 sps:$4 sm:$0xff]  }
  0xc0   :  { %1476 = vmatprep.subr.bf16.mxu0 %v3202_v48  ;;  %1599 = vmatprep.subr.bf16.mxu1 %v3203_v2  ;;  %v3206_v48 = vld [vmem:[%s4848_s2 + $0x24] ss:$16 sps:$4 sm:$0xff]  }
  0xc1   :  { %v3210_v2 = vld [vmem:[%s4848_s2 + $0x44] ss:$16 sps:$4 sm:$0xff]  }
  0xc2   :  { %1345 = vmatmul.mubr.bf16.vlgmr.msra.gmra.mrb[0].mxu0 %v42_v32  ;;  %1468 = vmatmul.mubr.bf16.vlgmr.msra.gmra.mrb[0].mxu1 %v42_v32  ;;  %v3208_v32 = vld [vmem:[%s4848_s2 + $0x20] ss:$16 sps:$4 sm:$0xff]  }
  0xc3   :  { %1477 = vmatpush1.bf16.msra.mxu0 %v3204_v39  ;;  %1600 = vmatpush1.bf16.msra.mxu1 %v3205_v5  ;;  %v3209_v5 = vld [vmem:[%s4848_s2 + $0x28] ss:$16 sps:$4 sm:$0xff]   ;;  %v3211_v39 = vld [vmem:[%s4848_s2 + $0x4c] ss:$16 sps:$4 sm:$0xff]  }
  0xc4   :  { %1478 = vmatprep.subr.bf16.mxu0 %v3206_v48  ;;  %1601 = vmatprep.subr.bf16.mxu1 %v3207_v46  ;;  %v3213_v48 = vld [vmem:[%s4848_s2 + $0x48] ss:$16 sps:$4 sm:$0xff]   ;;  %v3214_v46 = vld [vmem:[%s4848_s2 + $0x64] ss:$16 sps:$4 sm:$0xff]  }
  0xc5   :  { %1508 = vmatprep.mubr.bf16.mxu0 %v51_v30  ;;  %1631 = vmatprep.mubr.bf16.mxu1 %v51_v30  ;;  %v3212_v30 = vld [vmem:[%s4848_s2 + $0x40] ss:$16 sps:$4 sm:$0xff]  }
  0xc7   :  { %1479 = vmatpush1.bf16.msra.mxu0 %v3208_v32  ;;  %1602 = vmatpush1.bf16.msra.mxu1 %v3209_v5  ;;  %v3215_v32 = vld [vmem:[%s4848_s2 + $0x6c] ss:$16 sps:$4 sm:$0xff]   ;;  %v3216_v5 = vld [vmem:[%s4848_s2 + $0x60] ss:$16 sps:$4 sm:$0xff]  }
  0xc8   :  { %1480 = vmatprep.subr.bf16.mxu0 %v3210_v2  ;;  %1603 = vmatprep.subr.bf16.mxu1 %v3211_v39  ;;  %v3217_v2 = vld [vmem:[%s4848_s2 + $0x68] ss:$16 sps:$4 sm:$0xff]   ;;  %v3218_v39 = vld [vmem:[%s4848_s2 + $0x84] ss:$16 sps:$4 sm:$0xff]  }
  0xcb   :  { %1481 = vmatpush1.bf16.msra.mxu0 %v3212_v30  ;;  %1604 = vmatpush1.bf16.msra.mxu1 %v3213_v48  ;;  %v3219_v30 = vld [vmem:[%s4848_s2 + $0x8c] ss:$16 sps:$4 sm:$0xff]   ;;  %v3220_v48 = vld [vmem:[%s4848_s2 + $0x80] ss:$16 sps:$4 sm:$0xff]  }
  0xcc   :  { %1482 = vmatprep.subr.bf16.mxu0 %v3214_v46  ;;  %1605 = vmatprep.subr.bf16.mxu1 %v3215_v32  ;;  %v3221_v46 = vld [vmem:[%s4848_s2 + $0x88] ss:$16 sps:$4 sm:$0xff]   ;;  %v3222_v32 = vld [vmem:[%s4848_s2 + $0xa4] ss:$16 sps:$4 sm:$0xff]  }
  0xcf   :  { %1483 = vmatpush1.bf16.msra.mxu0 %v3216_v5  ;;  %1606 = vmatpush1.bf16.msra.mxu1 %v3217_v2  ;;  %v3223_v5 = vld [vmem:[%s4848_s2 + $0xac] ss:$16 sps:$4 sm:$0xff]   ;;  %v3224_v2 = vld [vmem:[%s4848_s2 + $0xa0] ss:$16 sps:$4 sm:$0xff]  }
  0xd0   :  { %1484 = vmatprep.subr.bf16.mxu0 %v3218_v39  ;;  %1607 = vmatprep.subr.bf16.mxu1 %v3219_v30  ;;  %v3225_v39 = vld [vmem:[%s4848_s2 + $0xa8] ss:$16 sps:$4 sm:$0xff]   ;;  %v3226_v30 = vld [vmem:[%s4848_s2 + $0xc4] ss:$16 sps:$4 sm:$0xff]  }
  0xd3   :  { %1485 = vmatpush1.bf16.msra.mxu0 %v3220_v48  ;;  %1608 = vmatpush1.bf16.msra.mxu1 %v3221_v46  ;;  %v3227_v48 = vld [vmem:[%s4848_s2 + $0xcc] ss:$16 sps:$4 sm:$0xff]   ;;  %v3228_v46 = vld [vmem:[%s4848_s2 + $0xc0] ss:$16 sps:$4 sm:$0xff]  }
  0xd4   :  { %1486 = vmatprep.subr.bf16.mxu0 %v3222_v32  ;;  %1609 = vmatprep.subr.bf16.mxu1 %v3223_v5  ;;  %v3229_v32 = vld [vmem:[%s4848_s2 + $0xc8] ss:$16 sps:$4 sm:$0xff]   ;;  %v3230_v5 = vld [vmem:[%s4848_s2 + $0xe4] ss:$16 sps:$4 sm:$0xff]  }
  0xd7   :  { %1487 = vmatpush1.bf16.msra.mxu0 %v3224_v2  ;;  %1610 = vmatpush1.bf16.msra.mxu1 %v3225_v39  ;;  %v3231_v2 = vld [vmem:[%s4848_s2 + $0xec] ss:$16 sps:$4 sm:$0xff]   ;;  %v3232_v39 = vld [vmem:[%s4848_s2 + $0xe0] ss:$16 sps:$4 sm:$0xff]  }
  0xd8   :  { %1488 = vmatprep.subr.bf16.mxu0 %v3226_v30  ;;  %1611 = vmatprep.subr.bf16.mxu1 %v3227_v48  ;;  %v3233_v30 = vld [vmem:[%s4848_s2 + $0xe8] ss:$16 sps:$4 sm:$0xff]   ;;  %v3234_v48 = vld [vmem:[%s4848_s2 + $0x104] ss:$16 sps:$4 sm:$0xff]  }
  0xdb   :  { %1489 = vmatpush1.bf16.msra.mxu0 %v3228_v46  ;;  %1612 = vmatpush1.bf16.msra.mxu1 %v3229_v32  ;;  %v3235_v46 = vld [vmem:[%s4848_s2 + $0x10c] ss:$16 sps:$4 sm:$0xff]   ;;  %v3236_v32 = vld [vmem:[%s4848_s2 + $0x100] ss:$16 sps:$4 sm:$0xff]  }
  0xdc   :  { %1490 = vmatprep.subr.bf16.mxu0 %v3230_v5  ;;  %1613 = vmatprep.subr.bf16.mxu1 %v3231_v2  ;;  %v3237_v5 = vld [vmem:[%s4848_s2 + $0x108] ss:$16 sps:$4 sm:$0xff]   ;;  %v3238_v2 = vld [vmem:[%s4848_s2 + $0x124] ss:$16 sps:$4 sm:$0xff]  }
  0xdf   :  { %1491 = vmatpush1.bf16.msra.mxu0 %v3232_v39  ;;  %1614 = vmatpush1.bf16.msra.mxu1 %v3233_v30  ;;  %v3239_v39 = vld [vmem:[%s4848_s2 + $0x12c] ss:$16 sps:$4 sm:$0xff]   ;;  %v3240_v30 = vld [vmem:[%s4848_s2 + $0x120] ss:$16 sps:$4 sm:$0xff]  }
  0xe0   :  { %1492 = vmatprep.subr.bf16.mxu0 %v3234_v48  ;;  %1615 = vmatprep.subr.bf16.mxu1 %v3235_v46  ;;  %v3241_v48 = vld [vmem:[%s4848_s2 + $0x128] ss:$16 sps:$4 sm:$0xff]   ;;  %v3242_v46 = vld [vmem:[%s4848_s2 + $0x144] ss:$16 sps:$4 sm:$0xff]  }
  0xe3   :  { %1493 = vmatpush1.bf16.msra.mxu0 %v3236_v32  ;;  %1616 = vmatpush1.bf16.msra.mxu1 %v3237_v5  ;;  %v3243_v32 = vld [vmem:[%s4848_s2 + $0x14c] ss:$16 sps:$4 sm:$0xff]   ;;  %v5091_v5 = vld [vmem:[#allocation51_spill] sm:$0xff] }
  0xe4   :  { %1494 = vmatprep.subr.bf16.mxu0 %v3238_v2  ;;  %1617 = vmatprep.subr.bf16.mxu1 %v3239_v39  ;;  %v5092_v2 = vld [vmem:[#allocation52_spill] sm:$0xff]  ;;  %v5093_v39 = vld [vmem:[#allocation53_spill] sm:$0xff] }
  0xe7   :  { %1495 = vmatpush1.bf16.msra.mxu0 %v3240_v30  ;;  %1618 = vmatpush1.bf16.msra.mxu1 %v3241_v48  ;;  %v5094_v30 = vld [vmem:[#allocation54_spill] sm:$0xff]  ;;  %v5095_v48 = vld [vmem:[#allocation55_spill] sm:$0xff] }
  0xe8   :  { %1496 = vmatprep.subr.bf16.mxu0 %v3242_v46  ;;  %1619 = vmatprep.subr.bf16.mxu1 %v3243_v32  ;;  %v5096_v46 = vld [vmem:[#allocation56_spill] sm:$0xff]  ;;  %v5097_v32 = vld [vmem:[#allocation57_spill] sm:$0xff] }
  0xeb   :  { %1497 = vmatpush1.bf16.msra.mxu0 %v3418_v42  ;;  %1620 = vmatpush1.bf16.msra.mxu1 %v3423_v43  ;;  %v44_v42 = vld [vmem:[%s4850_s1] sm:$0xff] }
  0xec   :  { %1498 = vmatprep.subr.bf16.mxu0 %v3428_v44  ;;  %1621 = vmatprep.subr.bf16.mxu1 %v3433_v45  ;;  %v50_v43 = vpack.c.bf16 %v44_v42, %v44_v42  ;;  %v47_v44 = vld [vmem:[%s4850_s1 + $0x18] sm:$0xff] }
  0xed   :  { %v53_v45 = vpack.c.bf16 %v47_v44, %v47_v44  ;;  %v5098_v42 = vld [vmem:[#allocation58_spill] sm:$0xff]  ;;  %v5100_v44 = vld [vmem:[#allocation60_spill] sm:$0xff] }
  0xef   :  { %1499 = vmatpush1.bf16.msra.mxu0 %v3441_v47  ;;  %1622 = vmatpush1.bf16.msra.mxu1 %v3448_v49  ;;  %v5043_v47 = vld [vmem:[#allocation3_spill] sm:$0xff]  ;;  %v5044_v49 = vld [vmem:[#allocation4_spill] sm:$0xff] }
  0xf0   :  { %1500 = vmatprep.subr.bf16.mxu0 %v3455_v50  ;;  %1623 = vmatprep.subr.bf16.mxu1 %v3460_v51  ;;  %v5045_v50 = vld [vmem:[#allocation5_spill] sm:$0xff]  ;;  %v5046_v51 = vld [vmem:[#allocation6_spill] sm:$0xff] }
  0xf3   :  { %1501 = vmatpush1.bf16.msra.mxu0 %v3467_v52  ;;  %1624 = vmatpush1.bf16.msra.mxu1 %v3472_v53  ;;  %v5047_v52 = vld [vmem:[#allocation7_spill] sm:$0xff]  ;;  %v5048_v53 = vld [vmem:[#allocation8_spill] sm:$0xff] }
  0xf4   :  { %1502 = vmatprep.subr.bf16.mxu0 %v3479_v54  ;;  %1625 = vmatprep.subr.bf16.mxu1 %v3484_v55  ;;  %v5049_v54 = vld [vmem:[#allocation9_spill] sm:$0xff]  ;;  %v5050_v55 = vld [vmem:[#allocation10_spill] sm:$0xff] }
  0xf7   :  { %1503 = vmatpush1.bf16.msra.mxu0 %v3491_v56  ;;  %1626 = vmatpush1.bf16.msra.mxu1 %v3496_v57  ;;  %v5051_v56 = vld [vmem:[#allocation11_spill] sm:$0xff]  ;;  %v5052_v57 = vld [vmem:[#allocation12_spill] sm:$0xff] }
  0xf8   :  { %1504 = vmatprep.subr.bf16.mxu0 %v3503_v58  ;;  %1627 = vmatprep.subr.bf16.mxu1 %v3508_v59  ;;  %v5053_v58 = vld [vmem:[#allocation13_spill] sm:$0xff]  ;;  %v5054_v59 = vld [vmem:[#allocation14_spill] sm:$0xff] }
  0xfb   :  { %1505 = vmatpush1.bf16.msra.mxu0 %v3515_v60  ;;  %1628 = vmatpush1.bf16.msra.mxu1 %v3520_v61  ;;  %v5055_v60 = vld [vmem:[#allocation15_spill] sm:$0xff]  ;;  %v5056_v61 = vld [vmem:[#allocation16_spill] sm:$0xff] }
  0xfc   :  { %1506 = vmatprep.subr.bf16.mxu0 %v3527_v62  ;;  %1629 = vmatprep.subr.bf16.mxu1 %v3532_v63  ;;  %v5057_v62 = vld [vmem:[#allocation17_spill] sm:$0xff]  ;;  %v5058_v63 = vld [vmem:[#allocation18_spill] sm:$0xff] }
  0xff   :  { %1507 = vmatpush1.bf16.msra.mxu0 %v3537_v0  ;;  %1630 = vmatpush1.bf16.msra.mxu1 %v3544_v1  ;;  %v5059_v0 = vld [vmem:[#allocation19_spill] sm:$0xff]  ;;  %v5060_v1 = vld [vmem:[#allocation20_spill] sm:$0xff] }
 0x100   :  { %1517 = vmatprep.subr.bf16.mxu0 %v3554_v3  ;;  %1640 = vmatprep.subr.bf16.mxu1 %v3559_v4  ;;  %v5061_v3 = vld [vmem:[#allocation21_spill] sm:$0xff]  ;;  %v5062_v4 = vld [vmem:[#allocation22_spill] sm:$0xff] }
 0x102   :  { %1509 = vmatmul.mubr.bf16.vlgmr.msra.gmra.mrb[4].mxu0 %v50_v43  ;;  %1632 = vmatmul.mubr.bf16.vlgmr.msra.gmra.mrb[4].mxu1 %v50_v43  ;;  %v5099_v43 = vld [vmem:[#allocation59_spill] sm:$0xff] }
 0x103   :  { %1518 = vmatpush1.bf16.msra.mxu0 %v3566_v6  ;;  %1641 = vmatpush1.bf16.msra.mxu1 %v3571_v7  ;;  %v5063_v6 = vld [vmem:[#allocation23_spill] sm:$0xff]  ;;  %v5064_v7 = vld [vmem:[#allocation24_spill] sm:$0xff] }
 0x104   :  { %1519 = vmatprep.subr.bf16.mxu0 %v3578_v8  ;;  %1642 = vmatprep.subr.bf16.mxu1 %v3583_v9  ;;  %v5065_v8 = vld [vmem:[#allocation25_spill] sm:$0xff]  ;;  %v5066_v9 = vld [vmem:[#allocation26_spill] sm:$0xff] }
 0x105   :  { %1549 = vmatprep.mubr.bf16.mxu0 %v53_v45  ;;  %1672 = vmatprep.mubr.bf16.mxu1 %v53_v45  ;;  %v5101_v45 = vld [vmem:[#allocation61_spill] sm:$0xff] }
 0x107   :  { %1520 = vmatpush1.bf16.msra.mxu0 %v3590_v10  ;;  %1643 = vmatpush1.bf16.msra.mxu1 %v3595_v11  ;;  %v5067_v10 = vld [vmem:[#allocation27_spill] sm:$0xff]  ;;  %v5068_v11 = vld [vmem:[#allocation28_spill] sm:$0xff] }
 0x108   :  { %1521 = vmatprep.subr.bf16.mxu0 %v3602_v12  ;;  %1644 = vmatprep.subr.bf16.mxu1 %v3607_v13  ;;  %v46_v12 = vld [vmem:[%s4850_s1 + $0x10] sm:$0xff] }
 0x109   :  { %v5069_v13 = vld [vmem:[#allocation29_spill] sm:$0xff] }
 0x10b   :  { %1522 = vmatpush1.bf16.msra.mxu0 %v3614_v14  ;;  %1645 = vmatpush1.bf16.msra.mxu1 %v3619_v15  ;;  %v5070_v14 = vld [vmem:[#allocation30_spill] sm:$0xff]  ;;  %v5071_v15 = vld [vmem:[#allocation31_spill] sm:$0xff] }
 0x10c   :  { %1523 = vmatprep.subr.bf16.mxu0 %v3626_v16  ;;  %1646 = vmatprep.subr.bf16.mxu1 %v3631_v17  ;;  %v49_v16 = vld [vmem:[%s4850_s1 + $0x28] sm:$0xff]  ;;  %v52_v17 = vpack.c.bf16 %v46_v12, %v46_v12 }
 0x10d   :  { %v5128_v12 = vld [vmem:[#allocation88_spill] sm:$0xff] }
 0x10f   :  { %1524 = vmatpush1.bf16.msra.mxu0 %v3638_v18  ;;  %1647 = vmatpush1.bf16.msra.mxu1 %v3643_v19  ;;  %v5072_v18 = vld [vmem:[#allocation32_spill] sm:$0xff]  ;;  %v5073_v19 = vld [vmem:[#allocation33_spill] sm:$0xff] }
 0x110   :  { %1525 = vmatprep.subr.bf16.mxu0 %v3650_v20  ;;  %1648 = vmatprep.subr.bf16.mxu1 %v3655_v21  ;;  %v5074_v20 = vld [vmem:[#allocation34_spill] sm:$0xff]  ;;  %v5075_v21 = vld [vmem:[#allocation35_spill] sm:$0xff] }
 0x113   :  { %1526 = vmatpush1.bf16.msra.mxu0 %v3662_v22  ;;  %1649 = vmatpush1.bf16.msra.mxu1 %v3667_v23  ;;  %v55_v22 = vpack.c.bf16 %v49_v16, %v49_v16  ;;  %v5076_v23 = vld [vmem:[#allocation36_spill] sm:$0xff] }
 0x114   :  { %1527 = vmatprep.subr.bf16.mxu0 %v3674_v24  ;;  %1650 = vmatprep.subr.bf16.mxu1 %v3679_v25  ;;  %v5077_v24 = vld [vmem:[#allocation37_spill] sm:$0xff]  ;;  %v5078_v25 = vld [vmem:[#allocation38_spill] sm:$0xff]  ;;  %v5132_v16 = vld [vmem:[#allocation92_spill] sm:$0xff] }
 0x117   :  { %1528 = vmatpush1.bf16.msra.mxu0 %v3686_v26  ;;  %1651 = vmatpush1.bf16.msra.mxu1 %v3691_v27  ;;  %v5079_v26 = vld [vmem:[#allocation39_spill] sm:$0xff]  ;;  %v5080_v27 = vld [vmem:[#allocation40_spill] sm:$0xff] }
 0x118   :  { %1529 = vmatprep.subr.bf16.mxu0 %v3698_v28  ;;  %1652 = vmatprep.subr.bf16.mxu1 %v3703_v29  ;;  %v5081_v28 = vld [vmem:[#allocation41_spill] sm:$0xff]  ;;  %v5082_v29 = vld [vmem:[#allocation42_spill] sm:$0xff] }
 0x11b   :  { %1530 = vmatpush1.bf16.msra.mxu0 %v3711_v31  ;;  %1653 = vmatpush1.bf16.msra.mxu1 %v3718_v33  ;;  %v5083_v31 = vld [vmem:[#allocation43_spill] sm:$0xff]  ;;  %v5084_v33 = vld [vmem:[#allocation44_spill] sm:$0xff] }
 0x11c   :  { %1531 = vmatprep.subr.bf16.mxu0 %v3723_v34  ;;  %1654 = vmatprep.subr.bf16.mxu1 %v3730_v35  ;;  %v5085_v34 = vld [vmem:[#allocation45_spill] sm:$0xff]  ;;  %v5086_v35 = vld [vmem:[#allocation46_spill] sm:$0xff] }
 0x11f   :  { %1532 = vmatpush1.bf16.msra.mxu0 %v3735_v36  ;;  %1655 = vmatpush1.bf16.msra.mxu1 %v3740_v37  ;;  %v5087_v36 = vld [vmem:[#allocation47_spill] sm:$0xff]  ;;  %v5088_v37 = vld [vmem:[#allocation48_spill] sm:$0xff] }
 0x120   :  { %1533 = vmatprep.subr.bf16.mxu0 %v5043_v47  ;;  %1656 = vmatprep.subr.bf16.mxu1 %v5044_v49  ;;  %v5102_v47 = vld [vmem:[#allocation62_spill] sm:$0xff]  ;;  %v5103_v49 = vld [vmem:[#allocation63_spill] sm:$0xff] }
 0x123   :  { %1534 = vmatpush1.bf16.msra.mxu0 %v5045_v50  ;;  %1657 = vmatpush1.bf16.msra.mxu1 %v5046_v51  ;;  %v5104_v50 = vld [vmem:[#allocation64_spill] sm:$0xff]  ;;  %v5105_v51 = vld [vmem:[#allocation65_spill] sm:$0xff] }
 0x124   :  { %1535 = vmatprep.subr.bf16.mxu0 %v5047_v52  ;;  %1658 = vmatprep.subr.bf16.mxu1 %v5048_v53  ;;  %v5106_v52 = vld [vmem:[#allocation66_spill] sm:$0xff]  ;;  %v5107_v53 = vld [vmem:[#allocation67_spill] sm:$0xff] }
 0x127   :  { %1536 = vmatpush1.bf16.msra.mxu0 %v5049_v54  ;;  %1659 = vmatpush1.bf16.msra.mxu1 %v5050_v55  ;;  %v5108_v54 = vld [vmem:[#allocation68_spill] sm:$0xff]  ;;  %v5109_v55 = vld [vmem:[#allocation69_spill] sm:$0xff] }
 0x128   :  { %1537 = vmatprep.subr.bf16.mxu0 %v5051_v56  ;;  %1660 = vmatprep.subr.bf16.mxu1 %v5052_v57  ;;  %v5110_v56 = vld [vmem:[#allocation70_spill] sm:$0xff]  ;;  %v5111_v57 = vld [vmem:[#allocation71_spill] sm:$0xff] }
 0x12b   :  { %1538 = vmatpush1.bf16.msra.mxu0 %v5053_v58  ;;  %1661 = vmatpush1.bf16.msra.mxu1 %v5054_v59  ;;  %v5112_v58 = vld [vmem:[#allocation72_spill] sm:$0xff]  ;;  %v5113_v59 = vld [vmem:[#allocation73_spill] sm:$0xff] }
 0x12c   :  { %1539 = vmatprep.subr.bf16.mxu0 %v5055_v60  ;;  %1662 = vmatprep.subr.bf16.mxu1 %v5056_v61  ;;  %v5114_v60 = vld [vmem:[#allocation74_spill] sm:$0xff]  ;;  %v5115_v61 = vld [vmem:[#allocation75_spill] sm:$0xff] }
 0x12f   :  { %1540 = vmatpush1.bf16.msra.mxu0 %v5057_v62  ;;  %1663 = vmatpush1.bf16.msra.mxu1 %v5058_v63  ;;  %v5116_v62 = vld [vmem:[#allocation76_spill] sm:$0xff]  ;;  %v5117_v63 = vld [vmem:[#allocation77_spill] sm:$0xff] }
 0x130   :  { %1541 = vmatprep.subr.bf16.mxu0 %v5059_v0  ;;  %1664 = vmatprep.subr.bf16.mxu1 %v5060_v1  ;;  %v5118_v0 = vld [vmem:[#allocation78_spill] sm:$0xff]  ;;  %v5119_v1 = vld [vmem:[#allocation79_spill] sm:$0xff] }
 0x133   :  { %1542 = vmatpush1.bf16.msra.mxu0 %v5061_v3  ;;  %1665 = vmatpush1.bf16.msra.mxu1 %v5062_v4  ;;  %v5120_v3 = vld [vmem:[#allocation80_spill] sm:$0xff]  ;;  %v5121_v4 = vld [vmem:[#allocation81_spill] sm:$0xff] }
 0x134   :  { %1543 = vmatprep.subr.bf16.mxu0 %v5063_v6  ;;  %1666 = vmatprep.subr.bf16.mxu1 %v5064_v7  ;;  %v5122_v6 = vld [vmem:[#allocation82_spill] sm:$0xff]  ;;  %v5123_v7 = vld [vmem:[#allocation83_spill] sm:$0xff] }
 0x137   :  { %1544 = vmatpush1.bf16.msra.mxu0 %v5065_v8  ;;  %1667 = vmatpush1.bf16.msra.mxu1 %v5066_v9  ;;  %v5124_v8 = vld [vmem:[#allocation84_spill] sm:$0xff]  ;;  %v5125_v9 = vld [vmem:[#allocation85_spill] sm:$0xff] }
 0x138   :  { %1545 = vmatprep.subr.bf16.mxu0 %v5067_v10  ;;  %1668 = vmatprep.subr.bf16.mxu1 %v5068_v11  ;;  %v5126_v10 = vld [vmem:[#allocation86_spill] sm:$0xff]  ;;  %v5127_v11 = vld [vmem:[#allocation87_spill] sm:$0xff] }
 0x13b   :  { %1546 = vmatpush1.bf16.msra.mxu0 %v5069_v13  ;;  %1669 = vmatpush1.bf16.msra.mxu1 %v3908_v41  ;;  %v5090_v41 = vld [vmem:[#allocation50_spill] sm:$0xff]  ;;  %v5129_v13 = vld [vmem:[#allocation89_spill] sm:$0xff] }
 0x13c   :  { %1547 = vmatprep.subr.bf16.mxu0 %v5070_v14  ;;  %1670 = vmatprep.subr.bf16.mxu1 %v5071_v15  ;;  %v5130_v14 = vld [vmem:[#allocation90_spill] sm:$0xff]  ;;  %v5131_v15 = vld [vmem:[#allocation91_spill] sm:$0xff] }
 0x13f   :  { %1548 = vmatpush1.bf16.msra.mxu0 %v5072_v18  ;;  %1671 = vmatpush1.bf16.msra.mxu1 %v5073_v19  ;;  %v5133_v18 = vld [vmem:[#allocation93_spill] sm:$0xff]  ;;  %v5134_v19 = vld [vmem:[#allocation94_spill] sm:$0xff] }
 0x140   :  { %1558 = vmatprep.subr.bf16.mxu0 %v5074_v20  ;;  %1681 = vmatprep.subr.bf16.mxu1 %v5075_v21  ;;  %v3138_v20 = vld [vmem:[%s4851_s4 + $0x140] sm:$0xff]  }
 0x141   :  { %v3139_v21 = vld [vmem:[%s4851_s4 + $0x1c0] sm:$0xff]  }
 0x142   :  { %1550 = vmatmul.mubr.bf16.vlgmr.msra.gmra.mrb[4].mxu0 %v52_v17  ;;  %1673 = vmatmul.mubr.bf16.vlgmr.msra.gmra.mrb[4].mxu1 %v52_v17  ;;  %v48_v17 = vld [vmem:[%s4850_s1 + $0x20] sm:$0xff] }
 0x143   :  { %1559 = vmatpush1.bf16.msra.mxu0 %v3954_v38  ;;  %1682 = vmatpush1.bf16.msra.mxu1 %v5076_v23  ;;  %v5089_v38 = vld [vmem:[#allocation49_spill] sm:$0xff]  ;;  %v5135_v23 = vld [vmem:[#allocation95_spill] sm:$0xff] }
 0x144   :  { %1560 = vmatprep.subr.bf16.mxu0 %v5077_v24  ;;  %1683 = vmatprep.subr.bf16.mxu1 %v5078_v25  ;;  %v3140_v24 = vld [vmem:[%s4851_s4 + $0x100] sm:$0xff]  }
 0x145   :  { %1590 = vmatprep.mubr.bf16.mxu0 %v55_v22  ;;  %1713 = vmatprep.mubr.bf16.mxu1 %v55_v22  ;;  %v54_v22 = vpack.c.bf16 %v48_v17, %v48_v17  ;;  %v3141_v25 = vld [vmem:[%s4851_s4 + $0x180] sm:$0xff]  }
 0x147   :  { %1561 = vmatpush1.bf16.msra.mxu0 %v5079_v26  ;;  %1684 = vmatpush1.bf16.msra.mxu1 %v5080_v27  ;;  %v3142_v26 = vld [vmem:[%s4851_s4 + $0x148] sm:$0xff]  }
 0x148   :  { %1562 = vmatprep.subr.bf16.mxu0 %v5081_v28  ;;  %1685 = vmatprep.subr.bf16.mxu1 %v5082_v29  ;;  %v3144_v27 = vld [vmem:[%s4851_s4 + $0x108] sm:$0xff]   ;;  %v3146_v29 = vld [vmem:[%s4851_s4 + $0x150] sm:$0xff]  }
 0x149   :  { %v3145_v28 = vld [vmem:[%s4851_s4 + $0x188] sm:$0xff]  }
 0x14b   :  { %1563 = vmatpush1.bf16.msra.mxu0 %v5083_v31  ;;  %1686 = vmatpush1.bf16.msra.mxu1 %v5084_v33  ;;  %v3147_v31 = vld [vmem:[%s4851_s4 + $0x1d0] sm:$0xff]  }
 0x14c   :  { %1564 = vmatprep.subr.bf16.mxu0 %v5085_v34  ;;  %1687 = vmatprep.subr.bf16.mxu1 %v5086_v35  ;;  %v3148_v33 = vld [vmem:[%s4851_s4 + $0x110] sm:$0xff]   ;;  %v3150_v35 = vld [vmem:[%s4851_s4 + $0x158] sm:$0xff]  }
 0x14d   :  { %v3149_v34 = vld [vmem:[%s4851_s4 + $0x190] sm:$0xff]  }
 0x14f   :  { %1565 = vmatpush1.bf16.msra.mxu0 %v5087_v36  ;;  %1688 = vmatpush1.bf16.msra.mxu1 %v5088_v37  ;;  %v3151_v36 = vld [vmem:[%s4851_s4 + $0x1d8] sm:$0xff]  }
 0x150   :  { %1566 = vmatprep.subr.bf16.mxu0 %v5089_v38  ;;  %1689 = vmatprep.subr.bf16.mxu1 %v5090_v41  ;;  %v3152_v37 = vld [vmem:[%s4851_s4 + $0x118] sm:$0xff]   ;;  %v3154_v41 = vld [vmem:[%s4851_s4 + $0x160] sm:$0xff]  }
 0x151   :  { %v3153_v38 = vld [vmem:[%s4851_s4 + $0x198] sm:$0xff]  }
 0x153   :  { %1567 = vmatpush1.bf16.msra.mxu0 %v5091_v5  ;;  %1690 = vmatpush1.bf16.msra.mxu1 %v5092_v2  ;;  %v3155_v5 = vld [vmem:[%s4851_s4 + $0x1e0] sm:$0xff]  }
 0x154   :  { %1568 = vmatprep.subr.bf16.mxu0 %v5093_v39  ;;  %1691 = vmatprep.subr.bf16.mxu1 %v5094_v30  ;;  %v3156_v2 = vld [vmem:[%s4851_s4 + $0x120] sm:$0xff]  }
 0x155   :  { %v3157_v39 = vld [vmem:[%s4851_s4 + $0x1a0] sm:$0xff]  }
 0x157   :  { %1569 = vmatpush1.bf16.msra.mxu0 %v5095_v48  ;;  %1692 = vmatpush1.bf16.msra.mxu1 %v5096_v46 }
 0x158   :  { %1570 = vmatprep.subr.bf16.mxu0 %v5097_v32  ;;  %1693 = vmatprep.subr.bf16.mxu1 %v5098_v42 }
 0x15b   :  { %1571 = vmatpush1.bf16.msra.mxu0 %v5099_v43  ;;  %1694 = vmatpush1.bf16.msra.mxu1 %v5100_v44 }
 0x15c   :  { %1572 = vmatprep.subr.bf16.mxu0 %v5101_v45  ;;  %1695 = vmatprep.subr.bf16.mxu1 %v5102_v47  ;;  %v3158_v47 = vld [vmem:[%s4851_s4 + $0x168] sm:$0xff]  }
 0x15f   :  { %1573 = vmatpush1.bf16.msra.mxu0 %v5103_v49  ;;  %1696 = vmatpush1.bf16.msra.mxu1 %v5104_v50  ;;  %v3159_v49 = vld [vmem:[%s4851_s4 + $0x1e8] sm:$0xff]  }
 0x160   :  { %1574 = vmatprep.subr.bf16.mxu0 %v5105_v51  ;;  %1697 = vmatprep.subr.bf16.mxu1 %v5106_v52  ;;  %v3160_v50 = vld [vmem:[%s4851_s4 + $0x128] sm:$0xff]   ;;  %v3162_v52 = vld [vmem:[%s4851_s4 + $0x170] sm:$0xff]  }
 0x161   :  { %v3161_v51 = vld [vmem:[%s4851_s4 + $0x1a8] sm:$0xff]  }
 0x163   :  { %1575 = vmatpush1.bf16.msra.mxu0 %v5107_v53  ;;  %1698 = vmatpush1.bf16.msra.mxu1 %v5108_v54  ;;  %v3163_v53 = vld [vmem:[%s4851_s4 + $0x1f0] sm:$0xff]  }
 0x164   :  { %1576 = vmatprep.subr.bf16.mxu0 %v5109_v55  ;;  %1699 = vmatprep.subr.bf16.mxu1 %v5110_v56  ;;  %v3164_v54 = vld [vmem:[%s4851_s4 + $0x130] sm:$0xff]   ;;  %v3166_v56 = vld [vmem:[%s4851_s4 + $0x178] sm:$0xff]  }
 0x165   :  { %v3165_v55 = vld [vmem:[%s4851_s4 + $0x1b0] sm:$0xff]  }
 0x167   :  { %1577 = vmatpush1.bf16.msra.mxu0 %v5111_v57  ;;  %1700 = vmatpush1.bf16.msra.mxu1 %v5112_v58  ;;  %v3167_v57 = vld [vmem:[%s4851_s4 + $0x1f8] sm:$0xff]  }
 0x168   :  { %1578 = vmatprep.subr.bf16.mxu0 %v5113_v59  ;;  %1701 = vmatprep.subr.bf16.mxu1 %v5114_v60  ;;  %v3168_v58 = vld [vmem:[%s4851_s4 + $0x138] sm:$0xff]   ;;  %v3170_v60 = vld [vmem:[%s4851_s4 + $0x40] sm:$0xff]  }
 0x169   :  { %v3169_v59 = vld [vmem:[%s4851_s4 + $0x1b8] sm:$0xff]  }
 0x16b   :  { %1579 = vmatpush1.bf16.msra.mxu0 %v5115_v61  ;;  %1702 = vmatpush1.bf16.msra.mxu1 %v5116_v62  ;;  %v3171_v61 = vld [vmem:[%s4851_s4 + $0xc0] sm:$0xff]   ;;  %v250_v62 = vlaneseq }
 0x16c   :  { %1580 = vmatprep.subr.bf16.mxu0 %v5117_v63  ;;  %1703 = vmatprep.subr.bf16.mxu1 %v5118_v0 }
 0x16d   :  { %v251_v63 = vshrl.u32 %v250_v62, 7  ;;  %v3185_v62 = vld [vmem:[%s4851_s4 + $0x98] sm:$0xff]  }
 0x16f   :  { %1581 = vmatpush1.bf16.msra.mxu0 %v5119_v1  ;;  %1704 = vmatpush1.bf16.msra.mxu1 %v5120_v3  ;;  %v256_v0 = vsub.s32 1, %v251_v63  ;;  %v264_v1 = vsub.s32 3, %v251_v63  ;;  %v248_v3 = vld [vmem:[%s4852_s3] sm:$0xf] }
 0x170   :  { %1582 = vmatprep.subr.bf16.mxu0 %v5121_v4  ;;  %1705 = vmatprep.subr.bf16.mxu1 %v5122_v6 }
 0x171   :  { %v257_v4 = vrot.slane %v248_v3, %v256_v0  ;;  %v265_v6 = vrot.slane %v248_v3, %v264_v1  ;;  %v3187_v0 = vld [vmem:[%s4851_s4 + $0xe0] sm:$0xff]  }
 0x172   :  { %v3188_v1 = vld [vmem:[%s4851_s4 + $0x20] sm:$0xff]  }
 0x173   :  { %1583 = vmatpush1.bf16.msra.mxu0 %v5123_v7  ;;  %1706 = vmatpush1.bf16.msra.mxu1 %v5124_v8  ;;  %v252_v7 = vsub.s32 0, %v251_v63  ;;  %v260_v8 = vsub.s32 2, %v251_v63  ;;  %v3186_v63 = vld [vmem:[%s4851_s4 + $0x60] sm:$0xff]  }
 0x174   :  { %1584 = vmatprep.subr.bf16.mxu0 %v5125_v9  ;;  %1707 = vmatprep.subr.bf16.mxu1 %v5126_v10 }
 0x177   :  { %1585 = vmatpush1.bf16.msra.mxu0 %v5127_v11  ;;  %1708 = vmatpush1.bf16.msra.mxu1 %v5128_v12  ;;  %v4736_v11 = vrot.slane %v248_v3, %v252_v7  ;;  %v4738_v12 = vrot.slane %v248_v3, %v260_v8  ;;  %v3189_v3 = vld [vmem:[%s4851_s4 + $0xa0] sm:$0xff]   ;;  %v3190_v7 = vld [vmem:[%s4851_s4 + $0x68] sm:$0xff]  }
 0x178   :  { %1586 = vmatprep.subr.bf16.mxu0 %v5129_v13  ;;  %1709 = vmatprep.subr.bf16.mxu1 %v5130_v14  ;;  %v3191_v8 = vld [vmem:[%s4851_s4 + $0xe8] sm:$0xff]  }
 0x17b   :  { %1587 = vmatpush1.bf16.msra.mxu0 %v5131_v15  ;;  %1710 = vmatpush1.bf16.msra.mxu1 %v5132_v16 }
 0x17c   :  { %1588 = vmatprep.subr.bf16.mxu0 %v5133_v18  ;;  %1711 = vmatprep.subr.bf16.mxu1 %v5134_v19 }
 0x17f   :  { %1589 = vmatpush1.bf16.msra.mxu0 %v4319_v40  ;;  %1712 = vmatpush1.bf16.msra.mxu1 %v5135_v23  ;;  %v3143_v40 = vld [vmem:[%s4851_s4 + $0x1c8] sm:$0xff]  }
 0x180   :  { %2722 = vmatprep.subr.bf16.mxu0 %v3138_v20  ;;  %2744 = vmatprep.subr.bf16.mxu1 %v3139_v21 }
 0x182   :  { %1591 = vmatmul.mubr.bf16.vlgmr.msra.gmra.mrb[4].mxu0 %v54_v22  ;;  %1714 = vmatmul.mubr.bf16.vlgmr.msra.gmra.mrb[4].mxu1 %v54_v22 }
 0x183   :  { %2723 = vmatpush3.bf16.msra.mxu0 %v3140_v24  ;;  %2745 = vmatpush3.bf16.msra.mxu1 %v3141_v25 }
 0x184   :  { %2724 = vmatprep.subr.bf16.mxu0 %v3142_v26  ;;  %2746 = vmatprep.subr.bf16.mxu1 %v3143_v40 }
 0x187   :  { %2725 = vmatpush3.bf16.msra.mxu0 %v3144_v27  ;;  %2747 = vmatpush3.bf16.msra.mxu1 %v3145_v28 }
 0x188   :  { %2726 = vmatprep.subr.bf16.mxu0 %v3146_v29  ;;  %2748 = vmatprep.subr.bf16.mxu1 %v3147_v31 }
 0x18b   :  { %2727 = vmatpush3.bf16.msra.mxu0 %v3148_v33  ;;  %2749 = vmatpush3.bf16.msra.mxu1 %v3149_v34 }
 0x18c   :  { %2728 = vmatprep.subr.bf16.mxu0 %v3150_v35  ;;  %2750 = vmatprep.subr.bf16.mxu1 %v3151_v36 }
 0x18f   :  { %2729 = vmatpush3.bf16.msra.mxu0 %v3152_v37  ;;  %2751 = vmatpush3.bf16.msra.mxu1 %v3153_v38 }
 0x190   :  { %2730 = vmatprep.subr.bf16.mxu0 %v3154_v41  ;;  %2752 = vmatprep.subr.bf16.mxu1 %v3155_v5 }
 0x193   :  { %2731 = vmatpush3.bf16.msra.mxu0 %v3156_v2  ;;  %2753 = vmatpush3.bf16.msra.mxu1 %v3157_v39 }
 0x194   :  { %2732 = vmatprep.subr.bf16.mxu0 %v3158_v47  ;;  %2754 = vmatprep.subr.bf16.mxu1 %v3159_v49  ;;  %v3174_v49 = vld [vmem:[%s4851_s4 + $0x48] sm:$0xff]  }
 0x195   :  { %v4687_v30 = vpop.f32.mrb[0].mxu0  ;;  %v4689_v48 = vpop.f32.mrb[0].mxu1 }
 0x196   :  { %v1348_v46 = vpop.f32.mrb[1].mxu0  ;;  %v1471_v32 = vpop.f32.mrb[1].mxu1 }
 0x197   :  { %v1350_v42 = vpop.f32.mrb[2].mxu0  ;;  %v1473_v43 = vpop.f32.mrb[2].mxu1  ;;  %2733 = vmatpush3.bf16.msra.mxu0 %v3160_v50  ;;  %2755 = vmatpush3.bf16.msra.mxu1 %v3161_v51  ;;  %v2811_v9 = vadd.f32 %v1348_v46, %v257_v4  ;;  %v2813_v10 = vadd.f32 %v1471_v32, %v265_v6  ;;  %v3175_v50 = vld [vmem:[%s4851_s4 + $0xc8] sm:$0xff]  }
 0x198   :  { %v1351_v44 = vpop.f32.mrb[3].mxu0  ;;  %v1474_v45 = vpop.f32.mrb[3].mxu1  ;;  %2734 = vmatprep.subr.bf16.mxu0 %v3162_v52  ;;  %2756 = vmatprep.subr.bf16.mxu1 %v3163_v53  ;;  %v3172_v43 = vld [vmem:[%s4851_s4] sm:$0xff]   ;;  %v3176_v53 = vld [vmem:[%s4851_s4 + $0x8] sm:$0xff]  }
 0x199   :  { %v1723_v15 = vmax.f32 %v2811_v9, 0.0  ;;  %v1725_v16 = vmax.f32 %v2813_v10, 0.0  ;;  %v3173_v44 = vld [vmem:[%s4851_s4 + $0x80] sm:$0xff]   ;;  %v3192_v9 = vld [vmem:[%s4851_s4 + $0x28] sm:$0xff]  }
 0x19b   :  { %2735 = vmatpush3.bf16.msra.mxu0 %v3164_v54  ;;  %2757 = vmatpush3.bf16.msra.mxu1 %v3165_v55  ;;  %v1727_v31 = vmin.f32 %v1723_v15, 255.0  ;;  %v1729_v33 = vmin.f32 %v1725_v16, 255.0  ;;  %v3177_v54 = vld [vmem:[%s4851_s4 + $0x88] sm:$0xff]   ;;  %v3178_v55 = vld [vmem:[%s4851_s4 + $0x50] sm:$0xff]  }
 0x19c   :  { %2736 = vmatprep.subr.bf16.mxu0 %v3166_v56  ;;  %2758 = vmatprep.subr.bf16.mxu1 %v3167_v57  ;;  %v3179_v56 = vld [vmem:[%s4851_s4 + $0xd0] sm:$0xff]  }
 0x19d   :  { %v1731_v39 = vmul.f32 %v1727_v31, %v1727_v31  ;;  %v1733_v46 = vmul.f32 %v1729_v33, %v1729_v33  ;;  %v3180_v57 = vld [vmem:[%s4851_s4 + $0x10] sm:$0xff]  }
 0x19f   :  { %2737 = vmatpush3.bf16.msra.mxu0 %v3168_v58  ;;  %2759 = vmatpush3.bf16.msra.mxu1 %v3169_v59  ;;  %v1735_v51 = vpack.c.bf16 %v1731_v39, %v1731_v39  ;;  %v1737_v52 = vpack.c.bf16 %v1733_v46, %v1733_v46  ;;  %v3181_v58 = vld [vmem:[%s4851_s4 + $0x90] sm:$0xff]   ;;  %v3182_v59 = vld [vmem:[%s4851_s4 + $0x58] sm:$0xff]  }
 0x1a0   :  { %2766 = vmatprep.subr.bf16.mxu0 %v3170_v60  ;;  %2788 = vmatprep.subr.bf16.mxu1 %v3171_v61  ;;  %v3183_v60 = vld [vmem:[%s4851_s4 + $0xd8] sm:$0xff]  }
 0x1a1   :  { %v3184_v61 = vld [vmem:[%s4851_s4 + $0x18] sm:$0xff]  }
 0x255   :  { %v1592_v13 = vpop.f32.mrb[4].mxu0  ;;  %v1715_v14 = vpop.f32.mrb[4].mxu1 }
 0x256   :  { %v2814_v17 = vadd.f32 %v1592_v13, %v4736_v11  ;;  %v2816_v18 = vadd.f32 %v1715_v14, %v4738_v12  ;;  %v1594_v19 = vpop.f32.mrb[5].mxu0  ;;  %v1717_v20 = vpop.f32.mrb[5].mxu1  ;;  %v3196_v13 = vld [vmem:[%s4851_s4 + $0x30] sm:$0xff]  }
 0x257   :  { %v2815_v21 = vadd.f32 %v1594_v19, %v257_v4  ;;  %v2817_v22 = vadd.f32 %v1717_v20, %v265_v6  ;;  %v1596_v23 = vpop.f32.mrb[6].mxu0  ;;  %v1719_v24 = vpop.f32.mrb[6].mxu1  ;;  %v2810_v4 = vadd.f32 %v4687_v30, %v4736_v11  ;;  %v2812_v6 = vadd.f32 %v4689_v48, %v4738_v12  ;;  %v3193_v30 = vld [vmem:[%s4851_s4 + $0xa8] sm:$0xff]   ;;  %v3194_v11 = vld [vmem:[%s4851_s4 + $0x70] sm:$0xff]   ;;  %v3200_v19 = vld [vmem:[%s4851_s4 + $0x38] sm:$0xff]  }
 0x258   :  { %v1738_v25 = vmax.f32 %v2814_v17, 0.0  ;;  %v1740_v26 = vmax.f32 %v2816_v18, 0.0  ;;  %v1597_v40 = vpop.f32.mrb[7].mxu0  ;;  %v1720_v27 = vpop.f32.mrb[7].mxu1  ;;  %v3195_v12 = vld [vmem:[%s4851_s4 + $0xf0] sm:$0xff]   ;;  %v3198_v17 = vld [vmem:[%s4851_s4 + $0x78] sm:$0xff]  }
 0x259   :  { %v1739_v28 = vmax.f32 %v2815_v21, 0.0  ;;  %v1741_v29 = vmax.f32 %v2817_v22, 0.0  ;;  %v1722_v48 = vmax.f32 %v2810_v4, 0.0  ;;  %v1724_v10 = vmax.f32 %v2812_v6, 0.0  ;;  %v3197_v14 = vld [vmem:[%s4851_s4 + $0xb0] sm:$0xff]   ;;  %v3199_v18 = vld [vmem:[%s4851_s4 + $0xf8] sm:$0xff]  }
 0x25a   :  { %v1742_v34 = vmin.f32 %v1738_v25, 255.0  ;;  %v1744_v35 = vmin.f32 %v1740_v26, 255.0  ;;  %v3201_v20 = vld [vmem:[%s4851_s4 + $0xb8] sm:$0xff]   ;;  %v13_v25 = vstv %s4853_s7 }
 0x25b   :  { %v1743_v36 = vmin.f32 %v1739_v28, 255.0  ;;  %v1745_v37 = vmin.f32 %v1741_v29, 255.0  ;;  %v1726_v15 = vmin.f32 %v1722_v48, 255.0  ;;  %v1728_v16 = vmin.f32 %v1724_v10, 255.0  ;;  %14 = vst [vmem:[#allocation2] sm:$0x1] %v13_v25 }
 0x25c   :  { %v1746_v38 = vmul.f32 %v1742_v34, %v1742_v34  ;;  %v1748_v41 = vmul.f32 %v1744_v35, %v1744_v35 }
 0x25d   :  { %v1747_v5 = vmul.f32 %v1743_v36, %v1743_v36  ;;  %v1749_v2 = vmul.f32 %v1745_v37, %v1745_v37  ;;  %v1730_v21 = vmul.f32 %v1726_v15, %v1726_v15  ;;  %v1732_v22 = vmul.f32 %v1728_v16, %v1728_v16 }
 0x25e   :  { %v1750_v45 = vpack.c.bf16 %v1746_v38, %v1746_v38  ;;  %v1752_v47 = vpack.c.bf16 %v1748_v41, %v1748_v41 }
 0x25f   :  { %v1751_v32 = vpack.c.bf16 %v1747_v5, %v1747_v5  ;;  %v1753_v42 = vpack.c.bf16 %v1749_v2, %v1749_v2  ;;  %v1734_v23 = vpack.c.bf16 %v1730_v21, %v1730_v21  ;;  %v1736_v24 = vpack.c.bf16 %v1732_v22, %v1732_v22 }
 0x261   :  { %2106 = vmatprep.mubr.bf16.mxu0 %v1751_v32  ;;  %2146 = vmatprep.mubr.bf16.mxu1 %v1753_v42 }
 0x262   :  { %2107 = vmatmul.mubr.bf16.vlgmr.msra.gmra.mrb[8].mxu0 %v1750_v45  ;;  %2147 = vmatmul.mubr.bf16.vlgmr.msra.gmra.mrb[8].mxu1 %v1752_v47  ;;  %v2719_v47 = vld [vmem:[%s4854_s5] ss:$0 sm:$0xff] }
 0x263   :  { %2767 = vmatpush3.bf16.msra.mxu0 %v3172_v43  ;;  %2789 = vmatpush3.bf16.msra.mxu1 %v3173_v44 }
 0x264   :  { %2378 = vmatprep.mubr.bf16.mxu0 %v1735_v51  ;;  %2418 = vmatprep.mubr.bf16.mxu1 %v1737_v52 }
 0x265   :  { %2768 = vmatprep.subr.bf16.mxu0 %v3174_v49  ;;  %2790 = vmatprep.subr.bf16.mxu1 %v3175_v50 }
 0x267   :  { %2769 = vmatpush3.bf16.msra.mxu0 %v3176_v53  ;;  %2791 = vmatpush3.bf16.msra.mxu1 %v3177_v54  ;;  %v2720_v53 = vld [vmem:[%s4855_s6] ss:$0 sm:$0xff] }
 0x268   :  { %2770 = vmatprep.subr.bf16.mxu0 %v3178_v55  ;;  %2792 = vmatprep.subr.bf16.mxu1 %v3179_v56 }
 0x26b   :  { %2771 = vmatpush3.bf16.msra.mxu0 %v3180_v57  ;;  %2793 = vmatpush3.bf16.msra.mxu1 %v3181_v58  ;;  %v2721_v57 = vld [vmem:[#allocation2] ss:$0 sm:$0xff] }
 0x26c   :  { %2772 = vmatprep.subr.bf16.mxu0 %v3182_v59  ;;  %2794 = vmatprep.subr.bf16.mxu1 %v3183_v60 }
 0x26f   :  { %2773 = vmatpush3.bf16.msra.mxu0 %v3184_v61  ;;  %2795 = vmatpush3.bf16.msra.mxu1 %v3185_v62 }
 0x270   :  { %2774 = vmatprep.subr.bf16.mxu0 %v3186_v63  ;;  %2796 = vmatprep.subr.bf16.mxu1 %v3187_v0 }
 0x273   :  { %2775 = vmatpush3.bf16.msra.mxu0 %v3188_v1  ;;  %2797 = vmatpush3.bf16.msra.mxu1 %v3189_v3 }
 0x274   :  { %2776 = vmatprep.subr.bf16.mxu0 %v3190_v7  ;;  %2798 = vmatprep.subr.bf16.mxu1 %v3191_v8 }
 0x277   :  { %2777 = vmatpush3.bf16.msra.mxu0 %v3192_v9  ;;  %2799 = vmatpush3.bf16.msra.mxu1 %v3193_v30 }
 0x278   :  { %2778 = vmatprep.subr.bf16.mxu0 %v3194_v11  ;;  %2800 = vmatprep.subr.bf16.mxu1 %v3195_v12 }
 0x27b   :  { %2779 = vmatpush3.bf16.msra.mxu0 %v3196_v13  ;;  %2801 = vmatpush3.bf16.msra.mxu1 %v3197_v14 }
 0x27c   :  { %2780 = vmatprep.subr.bf16.mxu0 %v3198_v17  ;;  %2802 = vmatprep.subr.bf16.mxu1 %v3199_v18 }
 0x27f   :  { %2781 = vmatpush3.bf16.msra.mxu0 %v3200_v19  ;;  %2803 = vmatpush3.bf16.msra.mxu1 %v3201_v20 }
 0x282   :  { %2379 = vmatmul.mubr.bf16.vlgmr.msra.gmra.mrb[12].mxu0 %v1734_v23  ;;  %2419 = vmatmul.mubr.bf16.vlgmr.msra.gmra.mrb[12].mxu1 %v1736_v24 }
 0x335   :  { %v2738_v26 = vpop.f32.mrb[8].mxu0  ;;  %v2760_v40 = vpop.f32.mrb[8].mxu1 }
 0x336   :  { %v2739_v27 = vpop.f32.mrb[9].mxu0  ;;  %v2761_v28 = vpop.f32.mrb[9].mxu1 }
 0x337   :  { %v2740_v29 = vadd.f32 %v2739_v27, %v2738_v26  ;;  %v2762_v31 = vadd.f32 %v2761_v28, %v2760_v40  ;;  %v2741_v33 = vpop.f32.mrb[10].mxu0  ;;  %v2763_v34 = vpop.f32.mrb[10].mxu1 }
 0x338   :  { %v2742_v35 = vpop.f32.mrb[11].mxu0  ;;  %v2764_v36 = vpop.f32.mrb[11].mxu1 }
 0x339   :  { %v2149_v37 = vadd.f32 %v2762_v31, %v2740_v29 }
 0x355   :  { %v2782_v38 = vpop.f32.mrb[12].mxu0  ;;  %v2804_v41 = vpop.f32.mrb[12].mxu1 }
 0x356   :  { %v2783_v5 = vpop.f32.mrb[13].mxu0  ;;  %v2805_v2 = vpop.f32.mrb[13].mxu1 }
 0x357   :  { %v2784_v39 = vadd.f32 %v2783_v5, %v2782_v38  ;;  %v2806_v46 = vadd.f32 %v2805_v2, %v2804_v41  ;;  %v2785_v32 = vpop.f32.mrb[14].mxu0  ;;  %v2807_v42 = vpop.f32.mrb[14].mxu1 }
 0x358   :  { %v2786_v43 = vpop.f32.mrb[15].mxu0  ;;  %v2808_v44 = vpop.f32.mrb[15].mxu1 }
 0x359   :  { %v2381_v45 = vadd.f32 %v2784_v39, %v2149_v37 }
 0x35b   :  { %v2421_v49 = vadd.f32 %v2806_v46, %v2381_v45 }
 0x35d   :  { %v2433_v50 = vadd.f32 %v2719_v47, %v2421_v49 }
 0x35f   :  { %v2434_v51 = vmax.f32 %v2433_v50, 0.0 }
 0x361   :  { %v2435_v52 = vmin.f32 %v2434_v51, 255.0 }
 0x363   :  { %v2436_v54 = vmul.f32 %v2435_v52, %v2435_v52 }
 0x365   :  { %v2444_v55 = vmul.f32 %v2720_v53, %v2436_v54 }
 0x367   :  { %v2446_v56 = vsel %vm2445_vm0, %v2444_v55, 0.0 }
 0x368   :  { %2447 = vadd.xlane.f32.xlu0 %v2446_v56 }
 0x3f5   :  { %v2448_v58 = vpop.xlane.xlu0 %2447 }
 0x3f6   :  { %v2456_v59 = vadd.f32 %v2721_v57, %v2448_v58 }
 0x3f8   :  { %2458 = vst.msk [vmem:[%s4856_s8] sm:$0xff] %vm2457_vm1, %v2456_v59 }

</bundles_post_ra>
